<compile_context>
chip_gen: v6e
topology: v6e:2x2x1
jax: 0.10.0
libtpu: 0.0.40
codegen_flags: <defaults>
</compile_context>

<pallas_src>
import functools
import jax
import jax.numpy as jnp
from jax.experimental import pallas as pl
from jax.experimental.pallas import tpu as pltpu


def _layer_norm(v, gamma, beta, eps=1e-5):
    mu = jnp.mean(v, axis=-1, keepdims=True)
    var = jnp.mean((v - mu) ** 2, axis=-1, keepdims=True)
    return (v - mu) * jax.lax.rsqrt(var + eps) * gamma + beta


def encoder_layer_kernel(
    x_ref,                                  # (S, D)  full sequence of one batch element, f32
    wq_ref, wk_ref, wv_ref,                 # (D, D)  bf16 (pre-transposed: x @ W)
    bq_ref, bk_ref, bv_ref,                 # (1, D)  f32
    wo_ref, bo_ref,                         # (D, D)  bf16, (1, D) f32
    g1_ref, be1_ref,                        # LayerNorm1 gamma/beta (1, D) f32
    w1_ref, b1_ref,                         # FFN linear1 (D, F) bf16, (1, F) f32
    w2_ref, b2_ref,                         # FFN linear2 (F, D) bf16, (1, D) f32
    g2_ref, be2_ref,                        # LayerNorm2 gamma/beta (1, D) f32
    out_ref,                                # (TQ, D) query-row tile of the output, f32
    k_scratch,                              # (H, Dh, S) bf16 VMEM — K pre-transposed
    v_scratch,                              # (H, S, Dh) bf16 VMEM
    *, nhead: int, tq: int,
):
    S, D = x_ref.shape
    Dh = D // nhead
    scale = 1.0 / (Dh ** 0.5)
    bf = jnp.bfloat16
    s_idx = pl.program_id(1)

    # ---- project K/V for the whole sequence once per batch element -----------
    @pl.when(s_idx == 0)
    def _():
        x_all = x_ref[...].astype(bf)
        k = jnp.dot(x_all, wk_ref[...], preferred_element_type=jnp.float32) + bk_ref[...]
        v = jnp.dot(x_all, wv_ref[...], preferred_element_type=jnp.float32) + bv_ref[...]
        kt = jnp.transpose(k)                              # (D, S) — single f32 transpose
        for h in range(nhead):                             # one-time per batch element
            k_scratch[h] = kt[h * Dh:(h + 1) * Dh, :].astype(bf)   # (Dh, S)
            v_scratch[h] = v[:, h * Dh:(h + 1) * Dh].astype(bf)    # (S, Dh)

    # ---- query-row tile -------------------------------------------------------
    row0 = pl.multiple_of(s_idx * tq, tq)
    x_tile = x_ref[pl.ds(row0, tq), :]                     # (TQ, D) f32
    xt_bf = x_tile.astype(bf)

    # fold 1/sqrt(Dh) into Q (TQ*D elements) instead of scaling the (H,TQ,S) scores
    q = (jnp.dot(xt_bf, wq_ref[...], preferred_element_type=jnp.float32)
         + bq_ref[...]) * scale
    qb = q.astype(bf)
    # head split via leading-axis stack of lane slices (proven lowering path).
    q3 = jnp.stack([qb[:, h * Dh:(h + 1) * Dh] for h in range(nhead)], axis=0)  # (H,TQ,Dh)

    # ---- attention, batched over heads ----------------------------------------
    # K is stored as (H, Dh, S): natural MXU orientation, lane-dense S output.
    scores = jax.lax.dot_general(                          # (H, TQ, S) f32
        q3, k_scratch[...],
        dimension_numbers=(((2,), (1,)), ((0,), (0,))),
        preferred_element_type=jnp.float32)
    scores = scores - jnp.max(scores, axis=-1, keepdims=True)
    p = jnp.exp(scores)                                    # softmax kept in f32
    p = p * pl.reciprocal(jnp.sum(p, axis=-1, keepdims=True), approx=True)
    ctx = jax.lax.dot_general(                             # (H, TQ, Dh) f32
        p.astype(bf), v_scratch[...],
        dimension_numbers=(((2,), (1,)), ((0,), (0,))),
        preferred_element_type=jnp.float32)

    # merge heads back to one (TQ, D) tile and do a single D-deep out-projection.
    ctx_m = jnp.concatenate([ctx[h] for h in range(nhead)], axis=-1).astype(bf)  # (TQ, D)
    attn = jnp.dot(ctx_m, wo_ref[...], preferred_element_type=jnp.float32) + bo_ref[...]

    # ---- residual + norm1 (norm_first=False path; dropout = eval identity) ----
    y = _layer_norm(x_tile + attn, g1_ref[...], be1_ref[...])

    # ---- feed-forward ----------------------------------------------------------
    h1 = jnp.dot(y.astype(bf), w1_ref[...], preferred_element_type=jnp.float32) + b1_ref[...]
    h1 = jnp.maximum(h1, 0.0)                              # relu
    ff = jnp.dot(h1.astype(bf), w2_ref[...], preferred_element_type=jnp.float32) + b2_ref[...]

    # ---- residual + norm2 ------------------------------------------------------
    out_ref[...] = _layer_norm(y + ff, g2_ref[...], be2_ref[...])


def _vmem_limit_bytes():
    try:
        cap = pltpu.get_tpu_info().vmem_capacity_bytes
        return min(int(cap * 0.75), 100 * 1024 * 1024)
    except Exception:
        return 48 * 1024 * 1024


def transformer_encoder_layer_bsd(x_bsd, params, nhead, *, tq=None):
    """(B, S, D)-native entry point — use this for stacked layers (no per-layer transposes)."""
    B, S, D = x_bsd.shape
    assert D % nhead == 0, "d_model must be divisible by nhead"
    Dh = D // nhead
    if tq is None:
        tq = S if S <= 256 else 256
    assert S % tq == 0 and (tq == S or tq % 8 == 0)

    bf = jnp.bfloat16
    plist = [
        params["wq"].astype(bf), params["wk"].astype(bf), params["wv"].astype(bf),
        params["bq"], params["bk"], params["bv"],
        params["wo"].astype(bf),                 # single (D, D) out-proj — no per-head split
        params["bo"],
        params["g1"], params["be1"],
        params["w1"].astype(bf), params["b1"],
        params["w2"].astype(bf), params["b2"],
        params["g2"], params["be2"],
    ]

    x_spec = pl.BlockSpec((None, S, D), lambda b, s: (b, 0, 0))
    w_specs = [pl.BlockSpec(p.shape, lambda b, s, n=p.ndim: (0,) * n) for p in plist]

    out = pl.pallas_call(
        functools.partial(encoder_layer_kernel, nhead=nhead, tq=tq),
        out_shape=jax.ShapeDtypeStruct((B, S, D), jnp.float32),
        grid=(B, S // tq),
        in_specs=[x_spec] + w_specs,
        out_specs=pl.BlockSpec((None, tq, D), lambda b, s: (b, s, 0)),
        scratch_shapes=[
            pltpu.VMEM((nhead, Dh, S), jnp.bfloat16),    # K, head-leading, pre-transposed
            pltpu.VMEM((nhead, S, Dh), jnp.bfloat16),    # V, head-leading
        ],
        compiler_params=pltpu.CompilerParams(
            dimension_semantics=("parallel", "arbitrary"),
            vmem_limit_bytes=_vmem_limit_bytes(),
        ),
    )(x_bsd, *plist)
    return out


def transformer_encoder_layer(x_sbd, params, nhead, *, tq=None):
    """PyTorch-layout wrapper: x (S, B, D), batch_first=False. For a stack of layers,
    keep activations in (B, S, D) and call transformer_encoder_layer_bsd directly."""
    out = transformer_encoder_layer_bsd(jnp.transpose(x_sbd, (1, 0, 2)), params, nhead, tq=tq)
    return jnp.transpose(out, (1, 0, 2))


def reference(x_sbd, params, nhead):
    """Pure-JAX reference mirroring the PyTorch forward (eval mode) at the same mixed
    precision as the kernel (bf16 matmul inputs, f32 accumulation / softmax / LN)."""
    bf = jnp.bfloat16
    x = jnp.transpose(x_sbd, (1, 0, 2))            # (B, S, D)
    B, S, D = x.shape
    Dh = D // nhead
    scale = 1.0 / (Dh ** 0.5)

    def mm(a, w):
        return jnp.dot(a.astype(bf), w.astype(bf), preferred_element_type=jnp.float32)

    q = (mm(x, params["wq"]) + params["bq"]) * scale   # scale folded into Q (matches kernel)
    k = mm(x, params["wk"]) + params["bk"]
    v = mm(x, params["wv"]) + params["bv"]
    q = q.reshape(B, S, nhead, Dh)
    k = k.reshape(B, S, nhead, Dh)
    v = v.reshape(B, S, nhead, Dh)
    s = jnp.einsum("bqhd,bkhd->bhqk", q.astype(bf), k.astype(bf),
                   preferred_element_type=jnp.float32)
    s = s - jnp.max(s, axis=-1, keepdims=True)
    p = jnp.exp(s)
    p = p / jnp.sum(p, axis=-1, keepdims=True)
    attn = jnp.einsum("bhqk,bkhd->bqhd", p.astype(bf), v.astype(bf),
                      preferred_element_type=jnp.float32).reshape(B, S, D)
    attn = mm(attn, params["wo"]) + params["bo"]

    def ln(v_, g, b):
        mu = jnp.mean(v_, axis=-1, keepdims=True)
        var = jnp.mean((v_ - mu) ** 2, axis=-1, keepdims=True)
        return (v_ - mu) * jax.lax.rsqrt(var + 1e-5) * g + b

    y = ln(x + attn, params["g1"], params["be1"])
    h1 = jnp.maximum(mm(y, params["w1"]) + params["b1"], 0.0)
    ff = mm(h1, params["w2"]) + params["b2"]
    out = ln(y + ff, params["g2"], params["be2"])
    return jnp.transpose(out, (1, 0, 2))


def make_params(key, d_model, nhead, dim_ff):
    ks = jax.random.split(key, 8)
    std = 0.1
    f32 = jnp.float32
    return {
        # attention in-proj (pre-transposed: x @ W), biases as (1, N) rows
        "wq": jax.random.normal(ks[0], (d_model, d_model), f32) * std,
        "wk": jax.random.normal(ks[1], (d_model, d_model), f32) * std,
        "wv": jax.random.normal(ks[2], (d_model, d_model), f32) * std,
        "bq": jax.random.normal(ks[3], (1, d_model), f32) * std,
        "bk": jax.random.normal(ks[4], (1, d_model), f32) * std,
        "bv": jax.random.normal(ks[5], (1, d_model), f32) * std,
        "wo": jax.random.normal(ks[6], (d_model, d_model), f32) * std,
        "bo": jnp.zeros((1, d_model), f32),
        "g1": jnp.ones((1, d_model), f32),
        "be1": jnp.zeros((1, d_model), f32),
        "w1": jax.random.normal(ks[7], (d_model, dim_ff), f32) * std,
        "b1": jnp.zeros((1, dim_ff), f32),
        "w2": jax.random.normal(jax.random.fold_in(key, 99), (dim_ff, d_model), f32) * std,
        "b2": jnp.zeros((1, d_model), f32),
        "g2": jnp.ones((1, d_model), f32),
        "be2": jnp.zeros((1, d_model), f32),
    }


if __name__ == "__main__":
    # seq, batch, d_model, nhead, dim_feedforward — SMALL correctness-check shape.
    # (Not a benchmarking shape: S/Dh < 128 lanes and only 4 grid steps; validate
    #  performance at S,D multiples of 128 with B*S/TQ >= ~16 steps.)
    S, B, D, H, F = 16, 2, 128, 4, 256
    key = jax.random.PRNGKey(0)
    kx, kp = jax.random.split(key)
    x = jax.random.normal(kx, (S, B, D), jnp.float32)       # PyTorch layout (S, B, D)
    params = make_params(kp, D, H, F)

    out = transformer_encoder_layer(x, params, nhead=H, tq=8)
    out = jax.block_until_ready(out)

    ref = reference(x, params, nhead=H)
    assert out.shape == (S, B, D)
    max_err = float(jnp.max(jnp.abs(out - ref)))
    assert jnp.allclose(out, ref, atol=2e-2, rtol=2e-2), f"mismatch vs reference (max err {max_err})"
    print("KERNEL_OK")
</pallas_src>

<mosaic_0001>
module attributes {stable_mosaic.version = 11 : i64} {
  func.func @encoder_layer_kernel(%arg0: i32, %arg1: i32, %arg2: memref<1x16x128xf32, #tpu.memory_space<vmem>>, %arg3: memref<128x128xbf16, #tpu.memory_space<vmem>>, %arg4: memref<128x128xbf16, #tpu.memory_space<vmem>>, %arg5: memref<128x128xbf16, #tpu.memory_space<vmem>>, %arg6: memref<1x128xf32, #tpu.memory_space<vmem>>, %arg7: memref<1x128xf32, #tpu.memory_space<vmem>>, %arg8: memref<1x128xf32, #tpu.memory_space<vmem>>, %arg9: memref<128x128xbf16, #tpu.memory_space<vmem>>, %arg10: memref<1x128xf32, #tpu.memory_space<vmem>>, %arg11: memref<1x128xf32, #tpu.memory_space<vmem>>, %arg12: memref<1x128xf32, #tpu.memory_space<vmem>>, %arg13: memref<128x256xbf16, #tpu.memory_space<vmem>>, %arg14: memref<1x256xf32, #tpu.memory_space<vmem>>, %arg15: memref<256x128xbf16, #tpu.memory_space<vmem>>, %arg16: memref<1x128xf32, #tpu.memory_space<vmem>>, %arg17: memref<1x128xf32, #tpu.memory_space<vmem>>, %arg18: memref<1x128xf32, #tpu.memory_space<vmem>>, %arg19: memref<1x8x128xf32, #tpu.memory_space<vmem>>, %arg20: memref<4x32x16xbf16, #tpu.memory_space<vmem>>, %arg21: memref<4x16x32xbf16, #tpu.memory_space<vmem>>) attributes {dimension_semantics = [#tpu.dimension_semantics<parallel>, #tpu.dimension_semantics<arbitrary>], iteration_bounds = array<i64: 2, 2>, scalar_prefetch = 0 : i64, scratch_operands = 2 : i64, tpu.core_type = #tpu.core_type<tc>, window_params = [{transform_indices = @transform_0, window_bounds = array<i64: 1, 16, 128>}, {pipeline_mode = #tpu.pipeline_mode<synchronous>, transform_indices = @transform_1, window_bounds = array<i64: 128, 128>}, {pipeline_mode = #tpu.pipeline_mode<synchronous>, transform_indices = @transform_2, window_bounds = array<i64: 128, 128>}, {pipeline_mode = #tpu.pipeline_mode<synchronous>, transform_indices = @transform_3, window_bounds = array<i64: 128, 128>}, {pipeline_mode = #tpu.pipeline_mode<synchronous>, transform_indices = @transform_4, window_bounds = array<i64: 1, 128>}, {pipeline_mode = #tpu.pipeline_mode<synchronous>, transform_indices = @transform_5, window_bounds = array<i64: 1, 128>}, {pipeline_mode = #tpu.pipeline_mode<synchronous>, transform_indices = @transform_6, window_bounds = array<i64: 1, 128>}, {pipeline_mode = #tpu.pipeline_mode<synchronous>, transform_indices = @transform_7, window_bounds = array<i64: 128, 128>}, {pipeline_mode = #tpu.pipeline_mode<synchronous>, transform_indices = @transform_8, window_bounds = array<i64: 1, 128>}, {pipeline_mode = #tpu.pipeline_mode<synchronous>, transform_indices = @transform_9, window_bounds = array<i64: 1, 128>}, {pipeline_mode = #tpu.pipeline_mode<synchronous>, transform_indices = @transform_10, window_bounds = array<i64: 1, 128>}, {pipeline_mode = #tpu.pipeline_mode<synchronous>, transform_indices = @transform_11, window_bounds = array<i64: 128, 256>}, {pipeline_mode = #tpu.pipeline_mode<synchronous>, transform_indices = @transform_12, window_bounds = array<i64: 1, 256>}, {pipeline_mode = #tpu.pipeline_mode<synchronous>, transform_indices = @transform_13, window_bounds = array<i64: 256, 128>}, {pipeline_mode = #tpu.pipeline_mode<synchronous>, transform_indices = @transform_14, window_bounds = array<i64: 1, 128>}, {pipeline_mode = #tpu.pipeline_mode<synchronous>, transform_indices = @transform_15, window_bounds = array<i64: 1, 128>}, {pipeline_mode = #tpu.pipeline_mode<synchronous>, transform_indices = @transform_16, window_bounds = array<i64: 1, 128>}, {transform_indices = @transform_17, window_bounds = array<i64: 1, 8, 128>}]} {
    %c0_i32 = arith.constant 0 : i32
    %0 = arith.cmpi eq, %arg1, %c0_i32 : i32
    %1 = arith.extui %0 : i1 to i32
    %c0_i32_0 = arith.constant 0 : i32
    %2 = arith.cmpi ne, %1, %c0_i32_0 : i32
    scf.if %2 {
      %c0_54 = arith.constant 0 : index
      %c0_55 = arith.constant 0 : index
      %c0_56 = arith.constant 0 : index
      %123 = vector.load %arg2[%c0_54, %c0_55, %c0_56] : memref<1x16x128xf32, #tpu.memory_space<vmem>>, vector<1x16x128xf32>
      %124 = vector.shape_cast %123 : vector<1x16x128xf32> to vector<16x128xf32>
      %125 = arith.truncf %124 : vector<16x128xf32> to vector<16x128xbf16>
      %c0_57 = arith.constant 0 : index
      %c0_58 = arith.constant 0 : index
      %126 = vector.load %arg4[%c0_57, %c0_58] : memref<128x128xbf16, #tpu.memory_space<vmem>>, vector<128x128xbf16>
      %cst_59 = arith.constant dense<0.000000e+00> : vector<16x128xf32>
      %127 = tpu.matmul %125, %126, %cst_59 {dimension_numbers = #tpu.dot_dimension_numbers<[1], [0], [0], [1], [0, 0, 1, 1], [], []>} : vector<16x128xbf16>, vector<128x128xbf16>, vector<16x128xf32> -> vector<16x128xf32>
      %c0_60 = arith.constant 0 : index
      %c0_61 = arith.constant 0 : index
      %128 = vector.load %arg7[%c0_60, %c0_61] : memref<1x128xf32, #tpu.memory_space<vmem>>, vector<1x128xf32>
      %129 = vector.broadcast %128 : vector<1x128xf32> to vector<16x128xf32>
      %130 = arith.addf %127, %129 : vector<16x128xf32>
      %c0_62 = arith.constant 0 : index
      %c0_63 = arith.constant 0 : index
      %131 = vector.load %arg5[%c0_62, %c0_63] : memref<128x128xbf16, #tpu.memory_space<vmem>>, vector<128x128xbf16>
      %cst_64 = arith.constant dense<0.000000e+00> : vector<16x128xf32>
      %132 = tpu.matmul %125, %131, %cst_64 {dimension_numbers = #tpu.dot_dimension_numbers<[1], [0], [0], [1], [0, 0, 1, 1], [], []>} : vector<16x128xbf16>, vector<128x128xbf16>, vector<16x128xf32> -> vector<16x128xf32>
      %c0_65 = arith.constant 0 : index
      %c0_66 = arith.constant 0 : index
      %133 = vector.load %arg8[%c0_65, %c0_66] : memref<1x128xf32, #tpu.memory_space<vmem>>, vector<1x128xf32>
      %134 = vector.broadcast %133 : vector<1x128xf32> to vector<16x128xf32>
      %135 = arith.addf %132, %134 : vector<16x128xf32>
      %136 = tpu.transpose %130, [1, 0] : vector<16x128xf32> -> vector<128x16xf32>
      %137 = vector.extract_strided_slice %136 {offsets = [0, 0], sizes = [32, 16], strides = [1, 1]} : vector<128x16xf32> to vector<32x16xf32>
      %138 = arith.truncf %137 : vector<32x16xf32> to vector<32x16xbf16>
      %c0_67 = arith.constant 0 : index
      %c0_68 = arith.constant 0 : index
      %c0_69 = arith.constant 0 : index
      %139 = vector.load %arg20[%c0_67, %c0_68, %c0_69] : memref<4x32x16xbf16, #tpu.memory_space<vmem>>, vector<1x32x16xbf16>
      %140 = vector.shape_cast %139 : vector<1x32x16xbf16> to vector<32x16xbf16>
      %141 = vector.shape_cast %138 : vector<32x16xbf16> to vector<1x32x16xbf16>
      tpu.vector_store %arg20[%c0_67, %c0_68, %c0_69], %141 {strides = array<i32>} : memref<4x32x16xbf16, #tpu.memory_space<vmem>>, vector<1x32x16xbf16>,
      %142 = vector.extract_strided_slice %135 {offsets = [0, 0], sizes = [16, 32], strides = [1, 1]} : vector<16x128xf32> to vector<16x32xf32>
      %143 = arith.truncf %142 : vector<16x32xf32> to vector<16x32xbf16>
      %c0_70 = arith.constant 0 : index
      %c0_71 = arith.constant 0 : index
      %c0_72 = arith.constant 0 : index
      %144 = vector.load %arg21[%c0_70, %c0_71, %c0_72] : memref<4x16x32xbf16, #tpu.memory_space<vmem>>, vector<1x16x32xbf16>
      %145 = vector.shape_cast %144 : vector<1x16x32xbf16> to vector<16x32xbf16>
      %146 = vector.shape_cast %143 : vector<16x32xbf16> to vector<1x16x32xbf16>
      tpu.vector_store %arg21[%c0_70, %c0_71, %c0_72], %146 {strides = array<i32>} : memref<4x16x32xbf16, #tpu.memory_space<vmem>>, vector<1x16x32xbf16>,
      %147 = vector.extract_strided_slice %136 {offsets = [32, 0], sizes = [32, 16], strides = [1, 1]} : vector<128x16xf32> to vector<32x16xf32>
      %148 = arith.truncf %147 : vector<32x16xf32> to vector<32x16xbf16>
      %c1 = arith.constant 1 : index
      %c0_73 = arith.constant 0 : index
      %c0_74 = arith.constant 0 : index
      %149 = vector.load %arg20[%c1, %c0_73, %c0_74] : memref<4x32x16xbf16, #tpu.memory_space<vmem>>, vector<1x32x16xbf16>
      %150 = vector.shape_cast %149 : vector<1x32x16xbf16> to vector<32x16xbf16>
      %151 = vector.shape_cast %148 : vector<32x16xbf16> to vector<1x32x16xbf16>
      tpu.vector_store %arg20[%c1, %c0_73, %c0_74], %151 {strides = array<i32>} : memref<4x32x16xbf16, #tpu.memory_space<vmem>>, vector<1x32x16xbf16>,
      %152 = vector.extract_strided_slice %135 {offsets = [0, 32], sizes = [16, 32], strides = [1, 1]} : vector<16x128xf32> to vector<16x32xf32>
      %153 = arith.truncf %152 : vector<16x32xf32> to vector<16x32xbf16>
      %c1_75 = arith.constant 1 : index
      %c0_76 = arith.constant 0 : index
      %c0_77 = arith.constant 0 : index
      %154 = vector.load %arg21[%c1_75, %c0_76, %c0_77] : memref<4x16x32xbf16, #tpu.memory_space<vmem>>, vector<1x16x32xbf16>
      %155 = vector.shape_cast %154 : vector<1x16x32xbf16> to vector<16x32xbf16>
      %156 = vector.shape_cast %153 : vector<16x32xbf16> to vector<1x16x32xbf16>
      tpu.vector_store %arg21[%c1_75, %c0_76, %c0_77], %156 {strides = array<i32>} : memref<4x16x32xbf16, #tpu.memory_space<vmem>>, vector<1x16x32xbf16>,
      %157 = vector.extract_strided_slice %136 {offsets = [64, 0], sizes = [32, 16], strides = [1, 1]} : vector<128x16xf32> to vector<32x16xf32>
      %158 = arith.truncf %157 : vector<32x16xf32> to vector<32x16xbf16>
      %c2 = arith.constant 2 : index
      %c0_78 = arith.constant 0 : index
      %c0_79 = arith.constant 0 : index
      %159 = vector.load %arg20[%c2, %c0_78, %c0_79] : memref<4x32x16xbf16, #tpu.memory_space<vmem>>, vector<1x32x16xbf16>
      %160 = vector.shape_cast %159 : vector<1x32x16xbf16> to vector<32x16xbf16>
      %161 = vector.shape_cast %158 : vector<32x16xbf16> to vector<1x32x16xbf16>
      tpu.vector_store %arg20[%c2, %c0_78, %c0_79], %161 {strides = array<i32>} : memref<4x32x16xbf16, #tpu.memory_space<vmem>>, vector<1x32x16xbf16>,
      %162 = vector.extract_strided_slice %135 {offsets = [0, 64], sizes = [16, 32], strides = [1, 1]} : vector<16x128xf32> to vector<16x32xf32>
      %163 = arith.truncf %162 : vector<16x32xf32> to vector<16x32xbf16>
      %c2_80 = arith.constant 2 : index
      %c0_81 = arith.constant 0 : index
      %c0_82 = arith.constant 0 : index
      %164 = vector.load %arg21[%c2_80, %c0_81, %c0_82] : memref<4x16x32xbf16, #tpu.memory_space<vmem>>, vector<1x16x32xbf16>
      %165 = vector.shape_cast %164 : vector<1x16x32xbf16> to vector<16x32xbf16>
      %166 = vector.shape_cast %163 : vector<16x32xbf16> to vector<1x16x32xbf16>
      tpu.vector_store %arg21[%c2_80, %c0_81, %c0_82], %166 {strides = array<i32>} : memref<4x16x32xbf16, #tpu.memory_space<vmem>>, vector<1x16x32xbf16>,
      %167 = vector.extract_strided_slice %136 {offsets = [96, 0], sizes = [32, 16], strides = [1, 1]} : vector<128x16xf32> to vector<32x16xf32>
      %168 = arith.truncf %167 : vector<32x16xf32> to vector<32x16xbf16>
      %c3 = arith.constant 3 : index
      %c0_83 = arith.constant 0 : index
      %c0_84 = arith.constant 0 : index
      %169 = vector.load %arg20[%c3, %c0_83, %c0_84] : memref<4x32x16xbf16, #tpu.memory_space<vmem>>, vector<1x32x16xbf16>
      %170 = vector.shape_cast %169 : vector<1x32x16xbf16> to vector<32x16xbf16>
      %171 = vector.shape_cast %168 : vector<32x16xbf16> to vector<1x32x16xbf16>
      tpu.vector_store %arg20[%c3, %c0_83, %c0_84], %171 {strides = array<i32>} : memref<4x32x16xbf16, #tpu.memory_space<vmem>>, vector<1x32x16xbf16>,
      %172 = vector.extract_strided_slice %135 {offsets = [0, 96], sizes = [16, 32], strides = [1, 1]} : vector<16x128xf32> to vector<16x32xf32>
      %173 = arith.truncf %172 : vector<16x32xf32> to vector<16x32xbf16>
      %c3_85 = arith.constant 3 : index
      %c0_86 = arith.constant 0 : index
      %c0_87 = arith.constant 0 : index
      %174 = vector.load %arg21[%c3_85, %c0_86, %c0_87] : memref<4x16x32xbf16, #tpu.memory_space<vmem>>, vector<1x16x32xbf16>
      %175 = vector.shape_cast %174 : vector<1x16x32xbf16> to vector<16x32xbf16>
      %176 = vector.shape_cast %173 : vector<16x32xbf16> to vector<1x16x32xbf16>
      tpu.vector_store %arg21[%c3_85, %c0_86, %c0_87], %176 {strides = array<i32>} : memref<4x16x32xbf16, #tpu.memory_space<vmem>>, vector<1x16x32xbf16>,
    } else {
    }
    %c8_i32 = arith.constant 8 : i32
    %3 = arith.muli %arg1, %c8_i32 : i32
    %4 = tpu.assume_multiple %3, 8 : i32
    %c0 = arith.constant 0 : index
    %5 = arith.index_cast %4 : i32 to index
    %c0_1 = arith.constant 0 : index
    %6 = vector.load %arg2[%c0, %5, %c0_1] : memref<1x16x128xf32, #tpu.memory_space<vmem>>, vector<1x8x128xf32>
    %7 = vector.shape_cast %6 : vector<1x8x128xf32> to vector<8x128xf32>
    %8 = arith.truncf %7 : vector<8x128xf32> to vector<8x128xbf16>
    %c0_2 = arith.constant 0 : index
    %c0_3 = arith.constant 0 : index
    %9 = vector.load %arg3[%c0_2, %c0_3] : memref<128x128xbf16, #tpu.memory_space<vmem>>, vector<128x128xbf16>
    %cst = arith.constant dense<0.000000e+00> : vector<8x128xf32>
    %10 = tpu.matmul %8, %9, %cst {dimension_numbers = #tpu.dot_dimension_numbers<[1], [0], [0], [1], [0, 0, 1, 1], [], []>} : vector<8x128xbf16>, vector<128x128xbf16>, vector<8x128xf32> -> vector<8x128xf32>
    %c0_4 = arith.constant 0 : index
    %c0_5 = arith.constant 0 : index
    %11 = vector.load %arg6[%c0_4, %c0_5] : memref<1x128xf32, #tpu.memory_space<vmem>>, vector<1x128xf32>
    %12 = vector.broadcast %11 : vector<1x128xf32> to vector<8x128xf32>
    %13 = arith.addf %10, %12 : vector<8x128xf32>
    %cst_6 = arith.constant 0.176776692 : f32
    %14 = vector.broadcast %cst_6 : f32 to vector<8x128xf32>
    %15 = arith.mulf %13, %14 : vector<8x128xf32>
    %16 = arith.truncf %15 : vector<8x128xf32> to vector<8x128xbf16>
    %17 = vector.extract_strided_slice %16 {offsets = [0, 0], sizes = [8, 32], strides = [1, 1]} : vector<8x128xbf16> to vector<8x32xbf16>
    %18 = vector.extract_strided_slice %16 {offsets = [0, 32], sizes = [8, 32], strides = [1, 1]} : vector<8x128xbf16> to vector<8x32xbf16>
    %19 = vector.extract_strided_slice %16 {offsets = [0, 64], sizes = [8, 32], strides = [1, 1]} : vector<8x128xbf16> to vector<8x32xbf16>
    %20 = vector.extract_strided_slice %16 {offsets = [0, 96], sizes = [8, 32], strides = [1, 1]} : vector<8x128xbf16> to vector<8x32xbf16>
    %21 = vector.shape_cast %17 : vector<8x32xbf16> to vector<1x8x32xbf16>
    %22 = vector.shape_cast %18 : vector<8x32xbf16> to vector<1x8x32xbf16>
    %23 = vector.shape_cast %19 : vector<8x32xbf16> to vector<1x8x32xbf16>
    %24 = vector.shape_cast %20 : vector<8x32xbf16> to vector<1x8x32xbf16>
    %25 = tpu.concatenate %21, %22, %23, %24 in 0 : vector<1x8x32xbf16>, vector<1x8x32xbf16>, vector<1x8x32xbf16>, vector<1x8x32xbf16> -> vector<4x8x32xbf16>
    %c0_7 = arith.constant 0 : index
    %c0_8 = arith.constant 0 : index
    %c0_9 = arith.constant 0 : index
    %26 = vector.load %arg20[%c0_7, %c0_8, %c0_9] : memref<4x32x16xbf16, #tpu.memory_space<vmem>>, vector<4x32x16xbf16>
    %cst_10 = arith.constant dense<0.000000e+00> : vector<4x8x16xf32>
    %27 = tpu.matmul %25, %26, %cst_10 {dimension_numbers = #tpu.dot_dimension_numbers<[2], [1], [1], [2], [0, 0, 0, 1, 1, 2], [0], [0]>} : vector<4x8x32xbf16>, vector<4x32x16xbf16>, vector<4x8x16xf32> -> vector<4x8x16xf32>
    %cst_11 = arith.constant dense<0xFF800000> : vector<4x8xf32>
    %28 = vector.multi_reduction <maximumf>, %27, %cst_11 [2] : vector<4x8x16xf32> to vector<4x8xf32>
    %29 = vector.shape_cast %28 : vector<4x8xf32> to vector<4x8x1xf32>
    %30 = vector.broadcast %29 : vector<4x8x1xf32> to vector<4x8x16xf32>
    %31 = arith.subf %27, %30 : vector<4x8x16xf32>
    %32 = math.exp %31 : vector<4x8x16xf32>
    %cst_12 = arith.constant dense<0.000000e+00> : vector<4x8xf32>
    %33 = vector.multi_reduction <add>, %32, %cst_12 [2] : vector<4x8x16xf32> to vector<4x8xf32>
    %34 = vector.shape_cast %33 : vector<4x8xf32> to vector<4x8x1xf32>
    %35 = tpu.reciprocal %34 {approx = true} : vector<4x8x1xf32> -> vector<4x8x1xf32>
    %36 = vector.broadcast %35 : vector<4x8x1xf32> to vector<4x8x16xf32>
    %37 = arith.mulf %32, %36 : vector<4x8x16xf32>
    %38 = arith.truncf %37 : vector<4x8x16xf32> to vector<4x8x16xbf16>
    %c0_13 = arith.constant 0 : index
    %c0_14 = arith.constant 0 : index
    %c0_15 = arith.constant 0 : index
    %39 = vector.load %arg21[%c0_13, %c0_14, %c0_15] : memref<4x16x32xbf16, #tpu.memory_space<vmem>>, vector<4x16x32xbf16>
    %cst_16 = arith.constant dense<0.000000e+00> : vector<4x8x32xf32>
    %40 = tpu.matmul %38, %39, %cst_16 {dimension_numbers = #tpu.dot_dimension_numbers<[2], [1], [1], [2], [0, 0, 0, 1, 1, 2], [0], [0]>} : vector<4x8x16xbf16>, vector<4x16x32xbf16>, vector<4x8x32xf32> -> vector<4x8x32xf32>
    %41 = vector.extract_strided_slice %40 {offsets = [0, 0, 0], sizes = [1, 8, 32], strides = [1, 1, 1]} : vector<4x8x32xf32> to vector<1x8x32xf32>
    %42 = vector.shape_cast %41 : vector<1x8x32xf32> to vector<8x32xf32>
    %43 = vector.extract_strided_slice %40 {offsets = [1, 0, 0], sizes = [1, 8, 32], strides = [1, 1, 1]} : vector<4x8x32xf32> to vector<1x8x32xf32>
    %44 = vector.shape_cast %43 : vector<1x8x32xf32> to vector<8x32xf32>
    %45 = vector.extract_strided_slice %40 {offsets = [2, 0, 0], sizes = [1, 8, 32], strides = [1, 1, 1]} : vector<4x8x32xf32> to vector<1x8x32xf32>
    %46 = vector.shape_cast %45 : vector<1x8x32xf32> to vector<8x32xf32>
    %47 = vector.extract_strided_slice %40 {offsets = [3, 0, 0], sizes = [1, 8, 32], strides = [1, 1, 1]} : vector<4x8x32xf32> to vector<1x8x32xf32>
    %48 = vector.shape_cast %47 : vector<1x8x32xf32> to vector<8x32xf32>
    %49 = tpu.concatenate %42, %44, %46, %48 in 1 : vector<8x32xf32>, vector<8x32xf32>, vector<8x32xf32>, vector<8x32xf32> -> vector<8x128xf32>
    %50 = arith.truncf %49 : vector<8x128xf32> to vector<8x128xbf16>
    %c0_17 = arith.constant 0 : index
    %c0_18 = arith.constant 0 : index
    %51 = vector.load %arg9[%c0_17, %c0_18] : memref<128x128xbf16, #tpu.memory_space<vmem>>, vector<128x128xbf16>
    %cst_19 = arith.constant dense<0.000000e+00> : vector<8x128xf32>
    %52 = tpu.matmul %50, %51, %cst_19 {dimension_numbers = #tpu.dot_dimension_numbers<[1], [0], [0], [1], [0, 0, 1, 1], [], []>} : vector<8x128xbf16>, vector<128x128xbf16>, vector<8x128xf32> -> vector<8x128xf32>
    %c0_20 = arith.constant 0 : index
    %c0_21 = arith.constant 0 : index
    %53 = vector.load %arg10[%c0_20, %c0_21] : memref<1x128xf32, #tpu.memory_space<vmem>>, vector<1x128xf32>
    %54 = vector.broadcast %53 : vector<1x128xf32> to vector<8x128xf32>
    %55 = arith.addf %52, %54 : vector<8x128xf32>
    %56 = arith.addf %7, %55 : vector<8x128xf32>
    %c0_22 = arith.constant 0 : index
    %c0_23 = arith.constant 0 : index
    %57 = vector.load %arg11[%c0_22, %c0_23] : memref<1x128xf32, #tpu.memory_space<vmem>>, vector<1x128xf32>
    %c0_24 = arith.constant 0 : index
    %c0_25 = arith.constant 0 : index
    %58 = vector.load %arg12[%c0_24, %c0_25] : memref<1x128xf32, #tpu.memory_space<vmem>>, vector<1x128xf32>
    %cst_26 = arith.constant dense<0.000000e+00> : vector<8xf32>
    %59 = vector.multi_reduction <add>, %56, %cst_26 [1] : vector<8x128xf32> to vector<8xf32>
    %60 = vector.shape_cast %59 : vector<8xf32> to vector<8x1xf32>
    %cst_27 = arith.constant 1.280000e+02 : f32
    %61 = vector.broadcast %cst_27 : f32 to vector<8x1xf32>
    %62 = arith.divf %60, %61 : vector<8x1xf32>
    %63 = vector.broadcast %62 : vector<8x1xf32> to vector<8x128xf32>
    %64 = arith.subf %56, %63 : vector<8x128xf32>
    %65 = arith.mulf %64, %64 : vector<8x128xf32>
    %cst_28 = arith.constant dense<0.000000e+00> : vector<8xf32>
    %66 = vector.multi_reduction <add>, %65, %cst_28 [1] : vector<8x128xf32> to vector<8xf32>
    %67 = vector.shape_cast %66 : vector<8xf32> to vector<8x1xf32>
    %cst_29 = arith.constant 1.280000e+02 : f32
    %68 = vector.broadcast %cst_29 : f32 to vector<8x1xf32>
    %69 = arith.divf %67, %68 : vector<8x1xf32>
    %70 = vector.broadcast %62 : vector<8x1xf32> to vector<8x128xf32>
    %71 = arith.subf %56, %70 : vector<8x128xf32>
    %cst_30 = arith.constant 9.99999974E-6 : f32
    %72 = vector.broadcast %cst_30 : f32 to vector<8x1xf32>
    %73 = arith.addf %69, %72 : vector<8x1xf32>
    %74 = math.rsqrt %73 : vector<8x1xf32>
    %75 = vector.broadcast %74 : vector<8x1xf32> to vector<8x128xf32>
    %76 = arith.mulf %71, %75 : vector<8x128xf32>
    %77 = vector.broadcast %57 : vector<1x128xf32> to vector<8x128xf32>
    %78 = arith.mulf %76, %77 : vector<8x128xf32>
    %79 = vector.broadcast %58 : vector<1x128xf32> to vector<8x128xf32>
    %80 = arith.addf %78, %79 : vector<8x128xf32>
    %81 = arith.truncf %80 : vector<8x128xf32> to vector<8x128xbf16>
    %c0_31 = arith.constant 0 : index
    %c0_32 = arith.constant 0 : index
    %82 = vector.load %arg13[%c0_31, %c0_32] : memref<128x256xbf16, #tpu.memory_space<vmem>>, vector<128x256xbf16>
    %cst_33 = arith.constant dense<0.000000e+00> : vector<8x256xf32>
    %83 = tpu.matmul %81, %82, %cst_33 {dimension_numbers = #tpu.dot_dimension_numbers<[1], [0], [0], [1], [0, 0, 1, 1], [], []>} : vector<8x128xbf16>, vector<128x256xbf16>, vector<8x256xf32> -> vector<8x256xf32>
    %c0_34 = arith.constant 0 : index
    %c0_35 = arith.constant 0 : index
    %84 = vector.load %arg14[%c0_34, %c0_35] : memref<1x256xf32, #tpu.memory_space<vmem>>, vector<1x256xf32>
    %85 = vector.broadcast %84 : vector<1x256xf32> to vector<8x256xf32>
    %86 = arith.addf %83, %85 : vector<8x256xf32>
    %cst_36 = arith.constant 0.000000e+00 : f32
    %87 = vector.broadcast %cst_36 : f32 to vector<8x256xf32>
    %88 = arith.maximumf %86, %87 : vector<8x256xf32>
    %89 = arith.truncf %88 : vector<8x256xf32> to vector<8x256xbf16>
    %c0_37 = arith.constant 0 : index
    %c0_38 = arith.constant 0 : index
    %90 = vector.load %arg15[%c0_37, %c0_38] : memref<256x128xbf16, #tpu.memory_space<vmem>>, vector<256x128xbf16>
    %cst_39 = arith.constant dense<0.000000e+00> : vector<8x128xf32>
    %91 = tpu.matmul %89, %90, %cst_39 {dimension_numbers = #tpu.dot_dimension_numbers<[1], [0], [0], [1], [0, 0, 1, 1], [], []>} : vector<8x256xbf16>, vector<256x128xbf16>, vector<8x128xf32> -> vector<8x128xf32>
    %c0_40 = arith.constant 0 : index
    %c0_41 = arith.constant 0 : index
    %92 = vector.load %arg16[%c0_40, %c0_41] : memref<1x128xf32, #tpu.memory_space<vmem>>, vector<1x128xf32>
    %93 = vector.broadcast %92 : vector<1x128xf32> to vector<8x128xf32>
    %94 = arith.addf %91, %93 : vector<8x128xf32>
    %95 = arith.addf %80, %94 : vector<8x128xf32>
    %c0_42 = arith.constant 0 : index
    %c0_43 = arith.constant 0 : index
    %96 = vector.load %arg17[%c0_42, %c0_43] : memref<1x128xf32, #tpu.memory_space<vmem>>, vector<1x128xf32>
    %c0_44 = arith.constant 0 : index
    %c0_45 = arith.constant 0 : index
    %97 = vector.load %arg18[%c0_44, %c0_45] : memref<1x128xf32, #tpu.memory_space<vmem>>, vector<1x128xf32>
    %cst_46 = arith.constant dense<0.000000e+00> : vector<8xf32>
    %98 = vector.multi_reduction <add>, %95, %cst_46 [1] : vector<8x128xf32> to vector<8xf32>
    %99 = vector.shape_cast %98 : vector<8xf32> to vector<8x1xf32>
    %cst_47 = arith.constant 1.280000e+02 : f32
    %100 = vector.broadcast %cst_47 : f32 to vector<8x1xf32>
    %101 = arith.divf %99, %100 : vector<8x1xf32>
    %102 = vector.broadcast %101 : vector<8x1xf32> to vector<8x128xf32>
    %103 = arith.subf %95, %102 : vector<8x128xf32>
    %104 = arith.mulf %103, %103 : vector<8x128xf32>
    %cst_48 = arith.constant dense<0.000000e+00> : vector<8xf32>
    %105 = vector.multi_reduction <add>, %104, %cst_48 [1] : vector<8x128xf32> to vector<8xf32>
    %106 = vector.shape_cast %105 : vector<8xf32> to vector<8x1xf32>
    %cst_49 = arith.constant 1.280000e+02 : f32
    %107 = vector.broadcast %cst_49 : f32 to vector<8x1xf32>
    %108 = arith.divf %106, %107 : vector<8x1xf32>
    %109 = vector.broadcast %101 : vector<8x1xf32> to vector<8x128xf32>
    %110 = arith.subf %95, %109 : vector<8x128xf32>
    %cst_50 = arith.constant 9.99999974E-6 : f32
    %111 = vector.broadcast %cst_50 : f32 to vector<8x1xf32>
    %112 = arith.addf %108, %111 : vector<8x1xf32>
    %113 = math.rsqrt %112 : vector<8x1xf32>
    %114 = vector.broadcast %113 : vector<8x1xf32> to vector<8x128xf32>
    %115 = arith.mulf %110, %114 : vector<8x128xf32>
    %116 = vector.broadcast %96 : vector<1x128xf32> to vector<8x128xf32>
    %117 = arith.mulf %115, %116 : vector<8x128xf32>
    %118 = vector.broadcast %97 : vector<1x128xf32> to vector<8x128xf32>
    %119 = arith.addf %117, %118 : vector<8x128xf32>
    %c0_51 = arith.constant 0 : index
    %c0_52 = arith.constant 0 : index
    %c0_53 = arith.constant 0 : index
    %120 = vector.load %arg19[%c0_51, %c0_52, %c0_53] : memref<1x8x128xf32, #tpu.memory_space<vmem>>, vector<1x8x128xf32>
    %121 = vector.shape_cast %120 : vector<1x8x128xf32> to vector<8x128xf32>
    %122 = vector.shape_cast %119 : vector<8x128xf32> to vector<1x8x128xf32>
    tpu.vector_store %arg19[%c0_51, %c0_52, %c0_53], %122 {strides = array<i32>} : memref<1x8x128xf32, #tpu.memory_space<vmem>>, vector<1x8x128xf32>,
    return
  }
  func.func @transform_0(%arg0: i32, %arg1: i32) -> (i32, i32, i32) {
    %c0_i32 = arith.constant 0 : i32
    %c0_i32_0 = arith.constant 0 : i32
    %c0_i32_1 = arith.constant 0 : i32
    return %arg0, %c0_i32, %c0_i32_0 : i32, i32, i32
  }
  func.func @transform_1(%arg0: i32, %arg1: i32) -> (i32, i32) {
    %c0_i32 = arith.constant 0 : i32
    %c0_i32_0 = arith.constant 0 : i32
    %c0_i32_1 = arith.constant 0 : i32
    return %c0_i32, %c0_i32_0 : i32, i32
  }
  func.func @transform_2(%arg0: i32, %arg1: i32) -> (i32, i32) {
    %c0_i32 = arith.constant 0 : i32
    %c0_i32_0 = arith.constant 0 : i32
    %c0_i32_1 = arith.constant 0 : i32
    return %c0_i32, %c0_i32_0 : i32, i32
  }
  func.func @transform_3(%arg0: i32, %arg1: i32) -> (i32, i32) {
    %c0_i32 = arith.constant 0 : i32
    %c0_i32_0 = arith.constant 0 : i32
    %c0_i32_1 = arith.constant 0 : i32
    return %c0_i32, %c0_i32_0 : i32, i32
  }
  func.func @transform_4(%arg0: i32, %arg1: i32) -> (i32, i32) {
    %c0_i32 = arith.constant 0 : i32
    %c0_i32_0 = arith.constant 0 : i32
    %c0_i32_1 = arith.constant 0 : i32
    return %c0_i32, %c0_i32_0 : i32, i32
  }
  func.func @transform_5(%arg0: i32, %arg1: i32) -> (i32, i32) {
    %c0_i32 = arith.constant 0 : i32
    %c0_i32_0 = arith.constant 0 : i32
    %c0_i32_1 = arith.constant 0 : i32
    return %c0_i32, %c0_i32_0 : i32, i32
  }
  func.func @transform_6(%arg0: i32, %arg1: i32) -> (i32, i32) {
    %c0_i32 = arith.constant 0 : i32
    %c0_i32_0 = arith.constant 0 : i32
    %c0_i32_1 = arith.constant 0 : i32
    return %c0_i32, %c0_i32_0 : i32, i32
  }
  func.func @transform_7(%arg0: i32, %arg1: i32) -> (i32, i32) {
    %c0_i32 = arith.constant 0 : i32
    %c0_i32_0 = arith.constant 0 : i32
    %c0_i32_1 = arith.constant 0 : i32
    return %c0_i32, %c0_i32_0 : i32, i32
  }
  func.func @transform_8(%arg0: i32, %arg1: i32) -> (i32, i32) {
    %c0_i32 = arith.constant 0 : i32
    %c0_i32_0 = arith.constant 0 : i32
    %c0_i32_1 = arith.constant 0 : i32
    return %c0_i32, %c0_i32_0 : i32, i32
  }
  func.func @transform_9(%arg0: i32, %arg1: i32) -> (i32, i32) {
    %c0_i32 = arith.constant 0 : i32
    %c0_i32_0 = arith.constant 0 : i32
    %c0_i32_1 = arith.constant 0 : i32
    return %c0_i32, %c0_i32_0 : i32, i32
  }
  func.func @transform_10(%arg0: i32, %arg1: i32) -> (i32, i32) {
    %c0_i32 = arith.constant 0 : i32
    %c0_i32_0 = arith.constant 0 : i32
    %c0_i32_1 = arith.constant 0 : i32
    return %c0_i32, %c0_i32_0 : i32, i32
  }
  func.func @transform_11(%arg0: i32, %arg1: i32) -> (i32, i32) {
    %c0_i32 = arith.constant 0 : i32
    %c0_i32_0 = arith.constant 0 : i32
    %c0_i32_1 = arith.constant 0 : i32
    return %c0_i32, %c0_i32_0 : i32, i32
  }
  func.func @transform_12(%arg0: i32, %arg1: i32) -> (i32, i32) {
    %c0_i32 = arith.constant 0 : i32
    %c0_i32_0 = arith.constant 0 : i32
    %c0_i32_1 = arith.constant 0 : i32
    return %c0_i32, %c0_i32_0 : i32, i32
  }
  func.func @transform_13(%arg0: i32, %arg1: i32) -> (i32, i32) {
    %c0_i32 = arith.constant 0 : i32
    %c0_i32_0 = arith.constant 0 : i32
    %c0_i32_1 = arith.constant 0 : i32
    return %c0_i32, %c0_i32_0 : i32, i32
  }
  func.func @transform_14(%arg0: i32, %arg1: i32) -> (i32, i32) {
    %c0_i32 = arith.constant 0 : i32
    %c0_i32_0 = arith.constant 0 : i32
    %c0_i32_1 = arith.constant 0 : i32
    return %c0_i32, %c0_i32_0 : i32, i32
  }
  func.func @transform_15(%arg0: i32, %arg1: i32) -> (i32, i32) {
    %c0_i32 = arith.constant 0 : i32
    %c0_i32_0 = arith.constant 0 : i32
    %c0_i32_1 = arith.constant 0 : i32
    return %c0_i32, %c0_i32_0 : i32, i32
  }
  func.func @transform_16(%arg0: i32, %arg1: i32) -> (i32, i32) {
    %c0_i32 = arith.constant 0 : i32
    %c0_i32_0 = arith.constant 0 : i32
    %c0_i32_1 = arith.constant 0 : i32
    return %c0_i32, %c0_i32_0 : i32, i32
  }
  func.func @transform_17(%arg0: i32, %arg1: i32) -> (i32, i32, i32) {
    %c0_i32 = arith.constant 0 : i32
    %c0_i32_0 = arith.constant 0 : i32
    return %arg0, %arg1, %c0_i32 : i32, i32, i32
  }
}

</mosaic_0001>

<bundles_post_ra>
// kernel: tpu_custom_call.1
= control target key start
LH: loop header
LB: loop body
LE: loop exit
PB: predicated region body
PF: predicated region fallthrough
CT: control target
= control target key end

     0   :  { %s3876_s0 = inlined_call_operand.hbm [shape: f32[2,16,128], index: 0, kind: input, shape index: {}]   ;;  %s3877_s1 = inlined_call_operand.hbm [shape: bf16[128,128], index: 1, kind: input, shape index: {}]   ;;  %s3878_s2 = inlined_call_operand.hbm [shape: bf16[128,128], index: 2, kind: input, shape index: {}]   ;;  %s3879_s3 = inlined_call_operand.hbm [shape: bf16[128,128], index: 3, kind: input, shape index: {}]   ;;  %s3880_s4 = inlined_call_operand.vmem [shape: f32[1,128], index: 4, kind: input, shape index: {}]   ;;  %s3881_s5 = inlined_call_operand.vmem [shape: f32[1,128], index: 5, kind: input, shape index: {}]   ;;  %s3882_s6 = inlined_call_operand.vmem [shape: f32[1,128], index: 6, kind: input, shape index: {}]   ;;  %s3883_s7 = inlined_call_operand.hbm [shape: bf16[128,128], index: 7, kind: input, shape index: {}]   ;;  %s3884_s8 = inlined_call_operand.vmem [shape: f32[1,128], index: 8, kind: input, shape index: {}]   ;;  %s3885_s9 = inlined_call_operand.vmem [shape: f32[1,128], index: 9, kind: input, shape index: {}]   ;;  %s3886_s10 = inlined_call_operand.vmem [shape: f32[1,128], index: 10, kind: input, shape index: {}]   ;;  %s3887_s11 = inlined_call_operand.hbm [shape: bf16[128,256], index: 11, kind: input, shape index: {}]   ;;  %s3888_s12 = inlined_call_operand.vmem [shape: f32[1,256], index: 12, kind: input, shape index: {}]   ;;  %s3889_s13 = inlined_call_operand.hbm [shape: bf16[256,128], index: 13, kind: input, shape index: {}]   ;;  %s3890_s14 = inlined_call_operand.vmem [shape: f32[1,128], index: 14, kind: input, shape index: {}]   ;;  %s3891_s15 = inlined_call_operand.vmem [shape: f32[1,128], index: 15, kind: input, shape index: {}]   ;;  %s3892_s16 = inlined_call_operand.vmem [shape: f32[1,128], index: 16, kind: input, shape index: {}]   ;;  %s3893_s17 = inlined_call_operand.hbm [shape: f32[2,16,128], index: 17, kind: output, shape index: {}]  }
   0x1   :  { %3905 = sst [smem:[#allocation26_spill]] %s3876_s0 }
   0x2   :  { %3906 = sst [smem:[#allocation27_spill]] %s3877_s1 }
   0x3   :  { %3907 = sst [smem:[#allocation28_spill]] %s3878_s2 }
   0x4   :  { %3908 = sst [smem:[#allocation29_spill]] %s3879_s3 }
   0x5   :  { %3909 = sst [smem:[#allocation30_spill]] %s3880_s4 }
   0x6   :  { %3910 = sst [smem:[#allocation31_spill]] %s3882_s6 }
   0x7   :  { %3911 = sst [smem:[#allocation32_spill]] %s3883_s7 }
   0x8   :  { %3912 = sst [smem:[#allocation33_spill]] %s3884_s8 }
   0x9   :  { %3913 = sst [smem:[#allocation34_spill]] %s3885_s9 }
   0xa   :  { %3914 = sst [smem:[#allocation35_spill]] %s3886_s10 }
   0xb   :  { %3915 = sst [smem:[#allocation36_spill]] %s3887_s11 }
   0xc   :  { %3916 = sst [smem:[#allocation37_spill]] %s3888_s12 }
   0xd   :  { %3917 = sst [smem:[#allocation38_spill]] %s3889_s13 }
   0xe   :  { %3918 = sst [smem:[#allocation39_spill]] %s3890_s14 }
   0xf   :  { %3919 = sst [smem:[#allocation40_spill]] %s3891_s15 }
  0x10   :  { %3920 = sst [smem:[#allocation41_spill]] %s3892_s16 }
  0x11   :  { %3921 = sst [smem:[#allocation42_spill]] %s3893_s17 }
  0x12   :  { %22 = vsyncpa [#allocation5], 0 }
  0x13   :  { %24 = vsyncpa [#allocation5 + $0x1], 0 }
  0x14   :  { %25 = vsyncpa [#allocation8], 0 }
  0x15   :  { %26 = vsyncpa [#allocation11], 0 }
  0x16   :  { %27 = vsyncpa [#allocation14], 0 }
  0x17   :  { %28 = vsyncpa [#allocation6], 0 }
  0x18   :  { %30 = vsyncpa [#allocation6 + $0x1], 0  ;;  %s3428_s24 = smov 0   ;;  %s3430_s25 = smov 0  }
  0x19   :  { %s3432_s26 = smov 0   ;;  %s3434_s27 = smov 0  }
  0x1a   :  { %s3436_s28 = smov 0   ;;  %s3438_s29 = smov 0  }
  0x1b   :  { %s3440_s0 = smov 0   ;;  %s3442_s30 = smov 0  }
  0x1c   :  { %s3444_s18 = smov 0   ;;  %s3446_s19 = smov 0  }
  0x1d   :  { %s3448_s1 = smov 0  }
  0x1e LB: > { %3922 = sst [smem:[#allocation22_spill]] %s3301_s30  ;;  %s2342_s20 = sadd.s32 4294967295, %s3313_s1   ;;  %s3313_s1 = sphi %s3448_s1, %s36_s1   ;;  %s3309_s19 = sphi %s3446_s19, %s3961_s19   ;;  %s3305_s18 = sphi %s3444_s18, %s3969_s18   ;;  %s3301_s30 = sphi %s3442_s30, %s3959_s30   ;;  %s3297_s0 = sphi %s3440_s0, %s3968_s0   ;;  %s3293_s29 = sphi %s3438_s29, %s3967_s29   ;;  %s3289_s28 = sphi %s3436_s28, %s3966_s28   ;;  %s3285_s27 = sphi %s3434_s27, %s3965_s27   ;;  %s3281_s26 = sphi %s3432_s26, %s3964_s26   ;;  %s3277_s25 = sphi %s3430_s25, %s3963_s25   ;;  %s3273_s24 = sphi %s3428_s24, %s3962_s24  }
  0x1f   : > { %3923 = sst [smem:[#allocation23_spill]] %s3309_s19  ;;  %p2344_p0 = scmp.ge.s32.totalorder %s3313_s1, 1 }
  0x20   : > { %p3485_p1 = scmp.eq.s32.totalorder %s2342_s20, 0  ;;  %p3489_p2 = scmp.eq.s32.totalorder %s2342_s20, 3 }
  0x21   : > { %p443_p3 = scmp.lt.s32.totalorder %s3313_s1, 5  ;;  %s3315_s17 = smov [#allocation7]  }
  0x22   : > { %s455_s16 = sshll.u32 %s3315_s17, 4  ;;  %s3316_s20 = smov [#allocation10]   ;;  %s456_s16 = int_to_ptr.vmem [resolvable:$true] %s455_s16 }
  0x23   : > { %p3494_p4 = pnand %p2344_p0, %p443_p3  ;;  %s481_s30 = sshll.u32 %s3316_s20, 4  ;;  %s3506_s30 = int_to_ptr.vmem [resolvable:$true] %s481_s30 }
  0x24   : > { %s3317_s14 = smov [#allocation13]   ;;  %s3008_s10 = scalar_lea.vmem %s456_s16, 1024 }
  0x25   : > { %s3926_s23 = scalar_select %p3494_p4, 1, 0 }
  0x26   : > { %p2743_p5 = pneg %p3494_p4  ;;  %s525_s12 = sshll.u32 %s3317_s14, 4  ;;  %s3508_s12 = int_to_ptr.vmem [resolvable:$true] %s525_s12 }
  0x27   : > { %p3009_p8 = scmp.ne.s32.totalorder %s456_s16, %s3008_s10  ;;  %p3016_p11 = scmp.lt.s32.totalorder %s456_s16, %s456_s16 }
  0x28   : > { %p3502_p6 = pnand %p2743_p5, %p3485_p1  ;;  %p3017_p12 = scmp.lt.s32.totalorder %s3008_s10, %s3008_s10 }
  0x2a   : > { %p3512_p7 = pneg %p3502_p6  ;;  %p3018_p13 = por %p3017_p12, %p3016_p11 }
  0x2c   : > { %p3011_p9 = pnand %p3009_p8, %p3512_p7 }
  0x2e   : > { %p3012_p10 = pneg %p3011_p9 }
  0x30   : > { %p3019_p0 = pnand %p3018_p13, %p3012_p10 }
  0x32   : > { %3022 = shalt.err (!%p3019_p0)
}
  0x33   : > { %s3895_s20 = smov 64   ;;  %s3897_s14 = smov 4  }
  0x34   : > { %s3929_s4 = sld [smem:[#allocation27_spill]]  ;;  %s3034_s6 = scalar_lea.vmem %s3506_s30, 1024 }
  0x35   : > { %p3035_p3 = scmp.ne.s32.totalorder %s3506_s30, %s3034_s6  ;;  %p3042_p9 = scmp.lt.s32.totalorder %s3506_s30, %s3506_s30 }
  0x36   : > { %p3043_p10 = scmp.lt.s32.totalorder %s3034_s6, %s3034_s6 }
  0x37   : > { %p3037_p5 = pnand %p3035_p3, %p3512_p7 }
  0x38   : > { %p3044_p11 = por %p3043_p10, %p3042_p9 }
  0x39   : > { %p3038_p8 = pneg %p3037_p5 }
  0x3a   : > { %2746 = dma.hbm_to_vmem [thread:$0]  (!%p3502_p6), %s3929_s4, 1024, %s456_s16, [#allocation8], %s3895_s20, %s3895_s20, %s3897_s14  }
  0x3b   : > { %p3045_p12 = pnand %p3044_p11, %p3038_p8 }
  0x3d   : > { %3048 = shalt.err (!%p3045_p12)
}
  0x3e   : > { %s3930_s3 = sld [smem:[#allocation29_spill]]  ;;  %s3060_s4 = scalar_lea.vmem %s3508_s12, 2048 }
  0x3f   : > { %p3061_p13 = scmp.ne.s32.totalorder %s3508_s12, %s3060_s4  ;;  %p3068_p5 = scmp.lt.s32.totalorder %s3508_s12, %s3508_s12 }
  0x40   : > { %p3069_p8 = scmp.lt.s32.totalorder %s3060_s4, %s3060_s4 }
  0x41   : > { %p3063_p0 = pnand %p3061_p13, %p3512_p7 }
  0x42   : > { %p3070_p9 = por %p3069_p8, %p3068_p5 }
  0x43   : > { %p3064_p3 = pneg %p3063_p0 }
  0x44   : > { %2752 = dma.hbm_to_vmem [thread:$0]  (!%p3502_p6), %s3930_s3, 1024, %s3506_s30, [#allocation11], %s3895_s20, %s3895_s20, %s3897_s14  }
  0x45   : > { %p3071_p10 = pnand %p3070_p9, %p3064_p3 }
  0x47   : > { %3074 = shalt.err (!%p3071_p10)
}
  0x48   : > { %s3900_s6 = smov 128   ;;  %s3901_s9 = smov 8  }
  0x49   : > { %s3931_s11 = sld [smem:[#allocation36_spill]]  ;;  %s3322_s10 = smov [#allocation9]  }
  0x4a   : > { %s468_s8 = sshll.u32 %s3322_s10, 4  ;;  %s3323_s20 = smov [#allocation12]   ;;  %s469_s8 = int_to_ptr.vmem [resolvable:$true] %s468_s8 }
  0x4b   : > { %s503_s4 = sshll.u32 %s3323_s20, 4  ;;  %s3086_s14 = scalar_lea.vmem %s469_s8, 1024  ;;  %s504_s4 = int_to_ptr.vmem [resolvable:$true] %s503_s4 }
  0x4c   : > { %p3087_p11 = scmp.ne.s32.totalorder %s469_s8, %s3086_s14  ;;  %p3094_p0 = scmp.lt.s32.totalorder %s469_s8, %s469_s8 }
  0x4d   : > { %p3095_p3 = scmp.lt.s32.totalorder %s3086_s14, %s3086_s14 }
  0x4e   : > { %p3089_p12 = pnand %p3087_p11, %p3512_p7 }
  0x4f   : > { %2758 = dma.hbm_to_vmem [thread:$0]  (!%p3502_p6), %s3931_s11, 2048, %s3508_s12, [#allocation14], %s3900_s6, %s3900_s6, %s3901_s9  }
  0x50   : > { %p3090_p13 = pneg %p3089_p12  ;;  %p3096_p5 = por %p3095_p3, %p3094_p0 }
  0x52   : > { %p3097_p8 = pnand %p3096_p5, %p3090_p13 }
  0x54   : > { %3100 = shalt.err (!%p3097_p8)
}
  0x55   : > { %s3932_s16 = smov 4   ;;  %s3933_s12 = smov 64  }
  0x56   : > { %s3934_s2 = sld [smem:[#allocation28_spill]]  ;;  %s3112_s20 = scalar_lea.vmem %s504_s4, 1024 }
  0x57   : > { %p3113_p9 = scmp.ne.s32.totalorder %s504_s4, %s3112_s20  ;;  %p3120_p12 = scmp.lt.s32.totalorder %s504_s4, %s504_s4 }
  0x58   : > { %p3121_p4 = scmp.lt.s32.totalorder %s3112_s20, %s3112_s20 }
  0x59   : > { %p3115_p10 = pnand %p3113_p9, %p3512_p7 }
  0x5a   : > { %p3122_p0 = por %p3121_p4, %p3120_p12 }
  0x5b   : > { %p3116_p11 = pneg %p3115_p10 }
  0x5c   : > { %2749 = dma.hbm_to_vmem [thread:$0]  (!%p3502_p6), %s3934_s2, 1024, %s469_s8, [#allocation8], %s3933_s12, %s3933_s12, %s3932_s16  }
  0x5d   : > { %p3123_p13 = pnand %p3122_p0, %p3116_p11 }
  0x5f   : > { %3126 = shalt.err (!%p3123_p13)
}
  0x60   : > { %s3935_s7 = sld [smem:[#allocation32_spill]]  ;;  %s3324_s8 = smov [#allocation15]  }
  0x61   : > { %s541_s30 = sshll.u32 %s3324_s8, 4  ;;  %s542_s30 = int_to_ptr.vmem [resolvable:$true] %s541_s30 }
  0x62   : > { %s3138_s10 = scalar_lea.vmem %s542_s30, 2048  ;;  %p3146_p8 = scmp.lt.s32.totalorder %s542_s30, %s542_s30 }
  0x63   : > { %p3139_p3 = scmp.ne.s32.totalorder %s542_s30, %s3138_s10  ;;  %p3147_p9 = scmp.lt.s32.totalorder %s3138_s10, %s3138_s10 }
  0x65   : > { %p3141_p5 = pnand %p3139_p3, %p3512_p7  ;;  %p3148_p10 = por %p3147_p9, %p3146_p8 }
  0x66   : > { %2755 = dma.hbm_to_vmem [thread:$0]  (!%p3502_p6), %s3935_s7, 1024, %s504_s4, [#allocation11], %s3933_s12, %s3933_s12, %s3932_s16  }
  0x67   : > { %p3142_p4 = pneg %p3141_p5 }
  0x69   : > { %p3149_p11 = pnand %p3148_p10, %p3142_p4 }
  0x6b   : > { %3152 = shalt.err (!%p3149_p11)
}
  0x6c   : > { %s3936_s13 = sld [smem:[#allocation38_spill]]  ;;  %s2343_s15 = sadd.s32 4294967294, %s3313_s1  }
  0x6d   : > { %s45_s17 = sadd.s32 1, %s3305_s18  ;;  %s48_s20 = sadd.s32 1, %s3309_s19 }
  0x6e   : > { %p46_p7 = scmp.ge.s32.totalorder %s45_s17, 2  ;;  %s55_s14 = sadd.s32 1, %s3293_s29 }
  0x6f   : > { %p62_p12 = scmp.ne.s32.totalorder %s3293_s29, %s3289_s28  ;;  %p63_p0 = scmp.eq.s32.totalorder %s3313_s1, 0 }
  0x70   : > { %s3971_s17 = smov (%p46_p7, %s45_s17), 0  ;;  %s3973_s20 = smov (!%p46_p7, %s48_s20), %s3309_s19 }
  0x71   : > { %3937 = sst [smem:[#allocation24_spill]] %s3971_s17  ;;  %p3596_p13 = por %p63_p0, %p62_p12 }
  0x72   : > { %2761 = dma.hbm_to_vmem [thread:$0]  (!%p3502_p6), %s3936_s13, 2048, %s542_s30, [#allocation14], %s3933_s12, %s3933_s12, %s3932_s16  }
  0x73   : > { %p68_p6 = scmp.ne.s32.totalorder %s3289_s28, %s3285_s27  ;;  %p50_p3 = scmp.ge.s32.totalorder %s3973_s20, 2 }
  0x74   : > { %s415_s12 = ssub.s32 %s3305_s18, %s3971_s17  ;;  %s419_s30 = sadd.s32 1, %s3281_s26 }
  0x75   : > { %p3606_p5 = por %p3485_p1, %p68_p6  ;;  %s3975_s20 = smov (%p50_p3, %s3973_s20), 0 }
  0x76   : > { %3940 = sst [smem:[#allocation25_spill]] %s3975_s20  ;;  %p429_p4 = scmp.ne.s32.totalorder %s3281_s26, %s3277_s25 }
  0x77   : > { %p435_p8 = scmp.ne.s32.totalorder %s3277_s25, %s3273_s24  ;;  %s52_s10 = ssub.s32 %s3309_s19, %s3975_s20 }
  0x78   : > { %p436_p9 = scmp.eq.s32.totalorder %s2343_s15, 3  ;;  %p53_p10 = scmp.eq.s32.totalorder %s52_s10, 0 }
  0x79   : > { %s416_s27 = sor.u32 %s415_s12, %s52_s10  ;;  %p3621_p7 = por %p3489_p2, %p429_p4 }
  0x7a   : > { %p417_p11 = scmp.eq.s32.totalorder %s416_s27, 0  ;;  %p3631_p12 = por %p436_p9, %p435_p8 }
  0x7b   : > { %s3626_s4 = scalar_select %p53_p10, %s3293_s29, %s55_s14  }
  0x7c   : > { %s3629_s9 = scalar_select %p417_p11, %s3281_s26, %s419_s30  }
  0x7d   : > { %p2776_p0 = scmp.lt.s32.totalorder %s3313_s1, 4  ;;  %s564_s3 = sand.u32 1, %s3293_s29  }
  0x7e   : > { %s2482_s7 = sshll.u32 %s3309_s19, 8  ;;  %s2352_s15 = sshll.u32 %s564_s3, 4 }
  0x7f   : > { %s3943_s10 = sld [smem:[#allocation26_spill]]  ;;  %s568_s27 = scalar_lea.vmem [#allocation4], %s2352_s15 }
  0x80   : > { %s575_s13 = sshll.u32 %s568_s27, 4  ;;  %p3643_p2 = pnand %p2776_p0, %p3596_p13  ;;  %s576_s13 = int_to_ptr.vmem [resolvable:$true] %s575_s13 }
  0x81   : > { %s565_s30 = scalar_lea.sflag [#allocation5], %s564_s3  ;;  %s3166_s20 = scalar_lea.vmem %s576_s13, 256 }
  0x82   : > { %p3155_p6 = pneg %p3643_p2  ;;  %p3167_p3 = scmp.ne.s32.totalorder %s576_s13, %s3166_s20 }
  0x83   : > { %s3325_s17 = smov [#allocation4]  }
  0x84   : > { %p3169_p4 = pnand %p3167_p3, %p3155_p6  ;;  %s3171_s19 = sshll.u32 %s3325_s17, 4  ;;  %s3172_s19 = int_to_ptr.vmem [resolvable:$false] %s3171_s19 }
  0x85   : > { %s574_s22 = scalar_lea.hbm %s3943_s10, %s2482_s7  ;;  %s3173_s7 = scalar_lea.vmem %s3172_s19, 512 }
  0x86   : > { %p3170_p8 = pneg %p3169_p4  ;;  %p3174_p9 = scmp.lt.s32.totalorder %s576_s13, %s3172_s19 }
  0x87   : > { %p3175_p10 = scmp.lt.s32.totalorder %s3173_s7, %s3166_s20 }
  0x89   : > { %p3176_p11 = por %p3175_p10, %p3174_p9 }
  0x8b   : > { %p3177_p13 = pnand %p3176_p11, %p3170_p8 }
  0x8d   : > { %3180 = shalt.err (!%p3177_p13)
}
  0x8e   : > { %s3945_s11 = smov 8   ;;  %s3946_s16 = smov 128  }
  0x8f   : > { %2765 = dma.hbm_to_vmem [thread:$0]  (!%p3643_p2), %s574_s22, 256, %s576_s13, %s565_s30, %s3946_s16, %s3946_s16, %s3945_s11  }
  0x90   : > { %p3947_p0 = scmp.ne.s32.totalorder %s3926_s23, 0 }
  0x91   : > { %s589_s3 = sand.u32 (!%p3947_p0), 1, %s3289_s28  }
  0x92   : > { %587 = sbr.rel (%p3947_p0) target bundleno = 3018 (0xbca), region = 88  ;;  %s2356_s17 = sshll.u32 (!%p3947_p0), %s589_s3, 4 }
  0x93   : > { %s590_s15 = scalar_lea.sflag (!%p3947_p0), [#allocation5], %s589_s3  ;;  %s3657_s12 = scalar_lea.vmem (!%p3947_p0), [#allocation4], %s2356_s17 }
  0x97   : > { %3252 = dma.done.wait (%p3606_p5), %s590_s15, 256  }
  0x98   : > { %3254 = vsyncadd (%p3606_p5), %s590_s15, 4294967040 }
  0x99   : > { %3256 = dma.done.wait (%p3485_p1), [#allocation8], 2048  }
  0x9a   : > { %3258 = vsyncadd (%p3485_p1), [#allocation8], 4294965248 }
  0x9b   : > { %3260 = dma.done.wait (%p3485_p1), [#allocation11], 2048  }
  0x9c   : > { %3262 = vsyncadd (%p3485_p1), [#allocation11], 4294965248 }
  0x9d   : > { %3264 = dma.done.wait (%p3485_p1), [#allocation14], 4096  }
  0x9e   : > { %3266 = vsyncadd (%p3485_p1), [#allocation14], 4294963200  ;;  %s665_s13 = sand.u32 1, %s3277_s25   ;;  %p2364_p5 = scmp.ne.s32.totalorder %s3297_s0, 0 }
  0x9f   : > { %s3678_s19 = sshll.u32 %s665_s13, 3  ;;  %s3948_s22 = sld [smem:[#allocation31_spill]] (!%p2364_p5) }
  0xa0   : > { %s667_s23 = scalar_lea.vmem [#allocation16], %s3678_s19  ;;  %672 = sbr.rel (%p2364_p5) target bundleno = 610 (0x262), region = 120 }
  0xa1   : > { %s3328_s27 = smov (!%p2364_p5), 96   ;;  %s3329_s14 = smov (!%p2364_p5), 32  }
  0xa2   : > { %s3330_s30 = smov (!%p2364_p5), 64  }
  0xa5   : > { %v2893_v0 = vld [vmem:[#allocation9 + $0x38] sm:$0xff]   ;;  %v3326_v1 = vmov 0.0   ;;  %v2894_v2 = vld [vmem:[#allocation9 + $0x30] sm:$0xff]   ;;  %vm3327_vm0 = vmmov 0   ;;  %v2895_v3 = vld [vmem:[#allocation9 + $0x28] sm:$0xff]   ;;  %vm961_vm1 = vcmask 257024  }
  0xa6   : > { %2579 = vmatprep.subr.bf16.mxu0 %v3326_v1  ;;  %2599 = vmatprep.subr.bf16.mxu1 %v3326_v1  ;;  %v2901_v4 = vld [vmem:[#allocation10 + $0x38] sm:$0xff]   ;;  %v2896_v5 = vld [vmem:[#allocation9 + $0x20] sm:$0xff]   ;;  %v2902_v6 = vld [vmem:[#allocation10 + $0x30] sm:$0xff]   ;;  %vm948_vm2 = vcmask 125952  }
  0xa7   : > { %2580 = vmatpush3.bf16.msra.mxu0 %v2893_v0  ;;  %2595 = vmatprep.mubr.msk.bf16.mxu0 %vm3327_vm0, %v3326_v1  ;;  %v2897_v7 = vld [vmem:[#allocation9 + $0x18] sm:$0xff]   ;;  %v2903_v8 = vld [vmem:[#allocation10 + $0x28] sm:$0xff]   ;;  %v2898_v9 = vld [vmem:[#allocation9 + $0x10] sm:$0xff]  }
  0xa8   : > { %2581 = vmatprep.subr.bf16.mxu0 %v3326_v1  ;;  %2615 = vmatprep.mubr.msk.bf16.mxu1 %vm3327_vm0, %v3326_v1  ;;  %v2904_v10 = vld [vmem:[#allocation10 + $0x20] sm:$0xff]   ;;  %v2899_v11 = vld [vmem:[#allocation9 + $0x8] sm:$0xff]   ;;  %v2905_v12 = vld [vmem:[#allocation10 + $0x18] sm:$0xff]  }
  0xa9   : > { %2600 = vmatpush3.bf16.msra.mxu1 %v2901_v4  ;;  %v2900_v13 = vld [vmem:[#allocation9] sm:$0xff]   ;;  %v674_v15 = vld [vmem:[%s3657_s12 + $0x8] sm:$0xff]  ;;  %v2906_v16 = vld [vmem:[#allocation10 + $0x10] sm:$0xff]  }
  0xaa   : > { %2601 = vmatprep.subr.bf16.mxu1 %v3326_v1  ;;  %v673_v14 = vld [vmem:[%s3657_s12] sm:$0xff]  ;;  %v2907_v18 = vld [vmem:[#allocation10 + $0x8] sm:$0xff]  }
  0xab   : > { %2582 = vmatpush3.bf16.msra.mxu0 %v2894_v2  ;;  %v675_v17 = vpack.c.bf16 %v674_v15, %v673_v14  ;;  %v2908_v19 = vld [vmem:[#allocation10] sm:$0xff]  }
  0xac   : > { %2583 = vmatprep.subr.bf16.mxu0 %v3326_v1  ;;  %v2365_v20 = vld [vmem:[%s3881_s5] ss:$0 sm:$0xff] }
  0xad   : > { %2602 = vmatpush3.bf16.msra.mxu1 %v2902_v6  ;;  %v2374_v27 = vld [vmem:[%s3948_s22] ss:$0 sm:$0xff] }
  0xae   : > { %2603 = vmatprep.subr.bf16.mxu1 %v3326_v1 }
  0xaf   : > { %2584 = vmatpush3.bf16.msra.mxu0 %v2895_v3 }
  0xb0   : > { %2585 = vmatprep.subr.bf16.mxu0 %v3326_v1 }
  0xb1   : > { %2604 = vmatpush3.bf16.msra.mxu1 %v2903_v8 }
  0xb2   : > { %2605 = vmatprep.subr.bf16.mxu1 %v3326_v1 }
  0xb3   : > { %2586 = vmatpush3.bf16.msra.mxu0 %v2896_v5 }
  0xb4   : > { %2587 = vmatprep.subr.bf16.mxu0 %v3326_v1 }
  0xb5   : > { %2606 = vmatpush3.bf16.msra.mxu1 %v2904_v10 }
  0xb6   : > { %2607 = vmatprep.subr.bf16.mxu1 %v3326_v1 }
  0xb7   : > { %2588 = vmatpush3.bf16.msra.mxu0 %v2897_v7 }
  0xb8   : > { %2589 = vmatprep.subr.bf16.mxu0 %v3326_v1 }
  0xb9   : > { %2608 = vmatpush3.bf16.msra.mxu1 %v2905_v12 }
  0xba   : > { %2609 = vmatprep.subr.bf16.mxu1 %v3326_v1 }
  0xbb   : > { %2590 = vmatpush3.bf16.msra.mxu0 %v2898_v9 }
  0xbc   : > { %2591 = vmatprep.subr.bf16.mxu0 %v3326_v1 }
  0xbd   : > { %2610 = vmatpush3.bf16.msra.mxu1 %v2906_v16 }
  0xbe   : > { %2611 = vmatprep.subr.bf16.mxu1 %v3326_v1 }
  0xbf   : > { %2592 = vmatpush3.bf16.msra.mxu0 %v2899_v11 }
  0xc0   : > { %2593 = vmatprep.subr.bf16.mxu0 %v3326_v1 }
  0xc1   : > { %2612 = vmatpush3.bf16.msra.mxu1 %v2907_v18 }
  0xc2   : > { %2613 = vmatprep.subr.bf16.mxu1 %v3326_v1 }
  0xc3   : > { %2594 = vmatpush3.bf16.msra.mxu0 %v2900_v13 }
  0xc5   : > { %2614 = vmatpush3.bf16.msra.mxu1 %v2908_v19 }
  0xc6   : > { %2596 = vmatmul.mubr.bf16.vlgmr.msra.gmra.mxu0 %v675_v17 }
  0xc8   : > { %2616 = vmatmul.mubr.bf16.vlgmr.msra.gmra.mxu1 %v675_v17 }
 0x186   : > { %v781_v21 = vpop.f32.mrf.mxu0 }
 0x187   : > { %v782_v22 = vadd.f32 %v2365_v20, %v781_v21 }
 0x188   : > { %v2597_v23 = vpop.f32.mrf.mxu0  ;;  %v893_v28 = vpop.f32.mrf.mxu1 }
 0x189   : > { %900 = vxpose.xlu0.b32.start [1/2] (short) %v782_v22, 128  ;;  %v894_v29 = vadd.f32 %v2374_v27, %v893_v28 }
 0x18a   : > { %v784_v24 = vpop.f32.mrf.mxu0  ;;  %v2617_v30 = vpop.f32.mrf.mxu1 }
 0x18b   : > { %v785_v25 = vadd.f32 %v2365_v20, %v784_v24  ;;  %v2487_v31 = vpack.c.bf16 %v894_v29, %v894_v29 }
 0x18c   : > { %v2598_v26 = vpop.f32.mrf.mxu0  ;;  %v896_v32 = vpop.f32.mrf.mxu1 }
 0x18d   : > { %901 = vxpose.xlu0.b32.end [2/2] (short) %v785_v25, 128  ;;  %962 = vst.msk [vmem:[#allocation3] sm:$0xf] %vm961_vm1, %v2487_v31  ;;  %985 = vrot.lane.b32.xlu1 %v2487_v31, %s3328_s27  ;;  %v897_v33 = vadd.f32 %v2374_v27, %v896_v32 }
 0x18e   : > { %v2618_v34 = vpop.f32.mrf.mxu1 }
 0x18f   : > { %v2488_v35 = vpack.c.bf16 %v897_v33, %v897_v33 }
 0x191   : > { %963 = vst.msk [vmem:[#allocation3 + $0x4] sm:$0xf] %vm961_vm1, %v2488_v35  ;;  %1045 = vrot.lane.b32.xlu1 %v2487_v31, %s3329_s14 }
 0x195   : > { %987 = vrot.lane.b32.xlu1 %v2488_v35, %s3328_s27 }
 0x199   : > { %1017 = vrot.lane.b32.xlu1 %v2488_v35, %s3330_s30 }
 0x19d   : > { %1047 = vrot.lane.b32.xlu1 %v2488_v35, %s3329_s14 }
 0x1ee   : > { %1015 = vrot.lane.b32.xlu0 %v2487_v31, %s3330_s30 }
 0x1ff   : > { %v986_v38 = vpop.permute.xlu1 %985 }
 0x200   : > { %992 = vst.msk [vmem:[#allocation3 + $0x8] sm:$0xf] %vm961_vm1, %v986_v38 }
 0x203   : > { %v1046_v41 = vpop.permute.xlu1 %1045 }
 0x204   : > { %1052 = vst.msk [vmem:[#allocation3 + $0x18] sm:$0xf] %vm961_vm1, %v1046_v41 }
 0x205   : > { %v916_v36 = vpop.trf.xlu0 }
 0x206   : > { %v2483_v37 = vpack.c.bf16 %v916_v36, %v916_v36 }
 0x207   : > { %v988_v44 = vpop.permute.xlu1 %987 }
 0x208   : > { %949 = vst.msk [vmem:[#allocation2] sm:$0xf] %vm948_vm2, %v2483_v37 }
 0x209   : > { %v917_v39 = vpop.trf.xlu0  ;;  %993 = vst.msk [vmem:[#allocation3 + $0xc] sm:$0xf] %vm961_vm1, %v988_v44 }
 0x20a   : > { %v2484_v40 = vpack.c.bf16 %v917_v39, %v917_v39 }
 0x20b   : > { %v1018_v47 = vpop.permute.xlu1 %1017 }
 0x20c   : > { %950 = vst.msk [vmem:[#allocation2 + $0x4] sm:$0xf] %vm948_vm2, %v2484_v40 }
 0x20d   : > { %v918_v42 = vpop.trf.xlu0  ;;  %1023 = vst.msk [vmem:[#allocation3 + $0x14] sm:$0xf] %vm961_vm1, %v1018_v47 }
 0x20e   : > { %v2485_v43 = vpack.c.bf16 %v918_v42, %v918_v42 }
 0x20f   : > { %v1048_v50 = vpop.permute.xlu1 %1047 }
 0x210   : > { %951 = vst.msk [vmem:[#allocation2 + $0x8] sm:$0xf] %vm948_vm2, %v2485_v43 }
 0x211   : > { %v919_v45 = vpop.trf.xlu0  ;;  %1053 = vst.msk [vmem:[#allocation3 + $0x1c] sm:$0xf] %vm961_vm1, %v1048_v50 }
 0x212   : > { %v2486_v46 = vpack.c.bf16 %v919_v45, %v919_v45 }
 0x214   : > { %952 = vst.msk [vmem:[#allocation2 + $0xc] sm:$0xf] %vm948_vm2, %v2486_v46 }
 0x215   : > { %v920_v48 = vpop.trf.xlu0 }
 0x216   : > { %v2489_v49 = vpack.c.bf16 %v920_v48, %v920_v48 }
 0x218   : > { %981 = vst.msk [vmem:[#allocation2 + $0x10] sm:$0xf] %vm948_vm2, %v2489_v49 }
 0x219   : > { %v921_v51 = vpop.trf.xlu0 }
 0x21a   : > { %v2490_v52 = vpack.c.bf16 %v921_v51, %v921_v51 }
 0x21c   : > { %982 = vst.msk [vmem:[#allocation2 + $0x14] sm:$0xf] %vm948_vm2, %v2490_v52 }
 0x21d   : > { %v922_v53 = vpop.trf.xlu0 }
 0x21e   : > { %v2491_v54 = vpack.c.bf16 %v922_v53, %v922_v53 }
 0x220   : > { %983 = vst.msk [vmem:[#allocation2 + $0x18] sm:$0xf] %vm948_vm2, %v2491_v54 }
 0x221   : > { %v923_v55 = vpop.trf.xlu0 }
 0x222   : > { %v2492_v56 = vpack.c.bf16 %v923_v55, %v923_v55 }
 0x224   : > { %984 = vst.msk [vmem:[#allocation2 + $0x1c] sm:$0xf] %vm948_vm2, %v2492_v56 }
 0x225   : > { %v924_v57 = vpop.trf.xlu0 }
 0x226   : > { %v2493_v58 = vpack.c.bf16 %v924_v57, %v924_v57 }
 0x228   : > { %1011 = vst.msk [vmem:[#allocation2 + $0x20] sm:$0xf] %vm948_vm2, %v2493_v58 }
 0x229   : > { %v925_v59 = vpop.trf.xlu0 }
 0x22a   : > { %v2494_v60 = vpack.c.bf16 %v925_v59, %v925_v59 }
 0x22c   : > { %1012 = vst.msk [vmem:[#allocation2 + $0x24] sm:$0xf] %vm948_vm2, %v2494_v60 }
 0x22d   : > { %v926_v61 = vpop.trf.xlu0 }
 0x22e   : > { %v2495_v62 = vpack.c.bf16 %v926_v61, %v926_v61 }
 0x230   : > { %1013 = vst.msk [vmem:[#allocation2 + $0x28] sm:$0xf] %vm948_vm2, %v2495_v62 }
 0x231   : > { %v927_v63 = vpop.trf.xlu0 }
 0x232   : > { %v2496_v0 = vpack.c.bf16 %v927_v63, %v927_v63 }
 0x234   : > { %1014 = vst.msk [vmem:[#allocation2 + $0x2c] sm:$0xf] %vm948_vm2, %v2496_v0 }
 0x235   : > { %v928_v1 = vpop.trf.xlu0 }
 0x236   : > { %v2497_v2 = vpack.c.bf16 %v928_v1, %v928_v1 }
 0x238   : > { %1041 = vst.msk [vmem:[#allocation2 + $0x30] sm:$0xf] %vm948_vm2, %v2497_v2 }
 0x239   : > { %v929_v3 = vpop.trf.xlu0 }
 0x23a   : > { %v2498_v4 = vpack.c.bf16 %v929_v3, %v929_v3 }
 0x23c   : > { %1042 = vst.msk [vmem:[#allocation2 + $0x34] sm:$0xf] %vm948_vm2, %v2498_v4 }
 0x23d   : > { %v930_v5 = vpop.trf.xlu0 }
 0x23e   : > { %v2499_v6 = vpack.c.bf16 %v930_v5, %v930_v5 }
 0x240   : > { %1043 = vst.msk [vmem:[#allocation2 + $0x38] sm:$0xf] %vm948_vm2, %v2499_v6 }
 0x241   : > { %v931_v7 = vpop.trf.xlu0 }
 0x242   : > { %v2500_v8 = vpack.c.bf16 %v931_v7, %v931_v7 }
 0x244   : > { %1044 = vst.msk [vmem:[#allocation2 + $0x3c] sm:$0xf] %vm948_vm2, %v2500_v8 }
 0x260   : > { %v1016_v9 = vpop.permute.xlu0 %1015 }
 0x261   : > { %1022 = vst.msk [vmem:[#allocation3 + $0x10] sm:$0xf] %vm961_vm1, %v1016_v9 }
 0x262 PF: > { %v2909_v10 = vld [vmem:[#allocation7 + $0x38] sm:$0xff]   ;;  %v3331_v11 = vmov 0.0   ;;  %v2910_v12 = vld [vmem:[#allocation7 + $0x30] sm:$0xff]   ;;  %vm3332_vm3 = vmmov 0   ;;  %v2911_v13 = vld [vmem:[#allocation7 + $0x28] sm:$0xff]   ;;  %s2401_s7 = sshll.u32 %s3297_s0, 3 }
 0x263   : > { %2619 = vmatprep.subr.bf16.mxu0 %v3331_v11  ;;  %2639 = vmatprep.subr.bf16.mxu1 %v3331_v11  ;;  %v2912_v14 = vld [vmem:[#allocation7 + $0x20] sm:$0xff]   ;;  %v2913_v15 = vld [vmem:[#allocation7 + $0x18] sm:$0xff]   ;;  %v2914_v16 = vld [vmem:[#allocation7 + $0x10] sm:$0xff]   ;;  %s1055_s11 = scalar_lea.vmem %s3657_s12, %s2401_s7 [#allocation4]  ;;  %s3949_s17 = sld [smem:[#allocation30_spill]]  ;;  %vm1206_vm4 = vcmask 261120   ;;  %vm1415_vm5 = vcmask 130048  }
 0x264   : > { %2620 = vmatpush3.bf16.msra.mxu0 %v2909_v10  ;;  %2635 = vmatprep.mubr.msk.bf16.mxu0 %vm3332_vm3, %v3331_v11  ;;  %v2915_v17 = vld [vmem:[#allocation7 + $0x8] sm:$0xff]   ;;  %v2916_v18 = vld [vmem:[#allocation7] sm:$0xff]   ;;  %v2919_v30 = vld [vmem:[#allocation2 + $0x18] sm:$0xff]   ;;  %s3333_s15 = smov 32   ;;  %s3334_s12 = smov 96   ;;  %vm1681_vm6 = vcmask 523264  }
 0x265   : > { %2621 = vmatprep.subr.bf16.mxu0 %v3331_v11  ;;  %2643 = vmatprep.mubr.msk.bf16.mxu1 %vm3332_vm3, %v3331_v11  ;;  %v3728_v19 = vld [vmem:[%s1055_s11] sm:$0xff]  ;;  %v2917_v21 = vld [vmem:[#allocation2 + $0x8] sm:$0xff]   ;;  %v2920_v32 = vld [vmem:[#allocation2 + $0x10] sm:$0xff]   ;;  %s3335_s21 = smov 64   ;;  %vm1683_vm7 = vcmask 785408   ;;  %s3950_s10 = sld [smem:[#allocation33_spill]] }
 0x266   : > { %v1057_v20 = vpack.c.bf16 %v3728_v19, %v3728_v19  ;;  %2640 = vmatpush3.bf16.msra.mxu1 %v2917_v21  ;;  %v2918_v22 = vld [vmem:[#allocation2] sm:$0xff]   ;;  %v2921_v33 = vld [vmem:[#allocation2 + $0x28] sm:$0xff]   ;;  %v2923_v36 = vld [vmem:[#allocation2 + $0x38] sm:$0xff]   ;;  %s3951_s14 = sld [smem:[#allocation34_spill]]  ;;  %s2200_s3 = sshll.u32 %s667_s23, 4  ;;  %s2201_s3 = int_to_ptr.vmem [resolvable:$true] %s2200_s3 }
 0x267   : > { %2641 = vmatprep.subr.bf16.mxu1 %v3331_v11  ;;  %v2922_v35 = vld [vmem:[#allocation2 + $0x20] sm:$0xff]   ;;  %v2924_v38 = vld [vmem:[#allocation2 + $0x30] sm:$0xff]   ;;  %s3952_s11 = sld [smem:[#allocation35_spill]] }
 0x268   : > { %2622 = vmatpush3.bf16.msra.mxu0 %v2910_v12  ;;  %v2925_v1 = vld [vmem:[#allocation3] sm:$0xff]   ;;  %s3955_s20 = sld [smem:[#allocation22_spill]] }
 0x269   : > { %2623 = vmatprep.subr.bf16.mxu0 %v3331_v11  ;;  %v2402_v23 = vld [vmem:[%s3949_s17] ss:$0 sm:$0xff]  ;;  %s3953_s17 = sld [smem:[#allocation37_spill]] }
 0x26a   : > { %2642 = vmatpush3.bf16.msra.mxu1 %v2918_v22  ;;  %v2926_v22 = vld [vmem:[#allocation3 + $0x8] sm:$0xff]  }
 0x26b   : > { %2647 = vmatprep.subr.bf16.mxu1 %v3331_v11 }
 0x26c   : > { %2624 = vmatpush3.bf16.msra.mxu0 %v2911_v13 }
 0x26d   : > { %2625 = vmatprep.subr.bf16.mxu0 %v3331_v11 }
 0x26e   : > { %s2478_s8 = sshll.u32 %s3955_s20, 1  ;;  %s3181_s20 = scalar_lea.vmem %s2201_s3, 128 }
 0x26f   : > { %p3182_p1 = scmp.ne.s32.totalorder %s2201_s3, %s3181_s20 }
 0x270   : > { %2626 = vmatpush3.bf16.msra.mxu0 %v2912_v14 }
 0x271   : > { %2627 = vmatprep.subr.bf16.mxu0 %v3331_v11  ;;  %p3183_p2 = pnand %p3182_p1, %p3621_p7 }
 0x273   : > { %p3184_p6 = pneg %p3183_p2 }
 0x274   : > { %2628 = vmatpush3.bf16.msra.mxu0 %v2913_v15 }
 0x275   : > { %2629 = vmatprep.subr.bf16.mxu0 %v3331_v11 }
 0x278   : > { %2630 = vmatpush3.bf16.msra.mxu0 %v2914_v16 }
 0x279   : > { %2631 = vmatprep.subr.bf16.mxu0 %v3331_v11 }
 0x27c   : > { %2632 = vmatpush3.bf16.msra.mxu0 %v2915_v17 }
 0x27d   : > { %2633 = vmatprep.subr.bf16.mxu0 %v3331_v11 }
 0x280   : > { %2634 = vmatpush3.bf16.msra.mxu0 %v2916_v18 }
 0x281   : > { %2695 = vmatprep.subr.bf16.mxu0 %v3331_v11 }
 0x283   : > { %2636 = vmatmul.mubr.bf16.vlgmr.msra.gmra.mxu0 %v1057_v20 }
 0x284   : > { %2711 = vmatprep.mubr.msk.bf16.mxu0 %vm3332_vm3, %v3331_v11 }
 0x343   : > { %v1163_v24 = vpop.f32.mrf.mxu0 }
 0x344   : > { %v1164_v25 = vadd.f32 %v2402_v23, %v1163_v24 }
 0x345   : > { %v2637_v26 = vpop.f32.mrf.mxu0 }
 0x346   : > { %v1169_v27 = vmul.f32 0.17677669, %v1164_v25 }
 0x347   : > { %v1166_v28 = vpop.f32.mrf.mxu0 }
 0x348   : > { %v1170_v29 = vpack.c.bf16 %v1169_v27, %v1169_v27 }
 0x349   : > { %v2638_v31 = vpop.f32.mrf.mxu0 }
 0x34a   : > { %1176 = vrot.lane.b32.xlu1 %v1170_v29, %s3333_s15  ;;  %1172 = vrot.lane.b32.xlu0 %v1170_v29, %s3334_s12 }
 0x34b   : > { %2644 = vmatmul.mubr.msk.bf16.vlgmr.msra.gmra.mxu1 %vm1206_vm4, %v1170_v29 }
 0x34c   : > { %2648 = vmatpush3.bf16.msra.mxu1 %v2919_v30  ;;  %2651 = vmatprep.mubr.msk.bf16.mxu1 %vm3332_vm3, %v3331_v11 }
 0x34d   : > { %2649 = vmatprep.subr.bf16.mxu1 %v3331_v11 }
 0x34e   : > { %1174 = vrot.lane.b32.xlu0 %v1170_v29, %s3335_s21  ;;  %v2927_v29 = vld [vmem:[#allocation3 + $0x10] sm:$0xff]  }
 0x350   : > { %2650 = vmatpush3.bf16.msra.mxu1 %v2920_v32 }
 0x351   : > { %2655 = vmatprep.subr.bf16.mxu1 %v3331_v11 }
 0x3bc   : > { %v1173_v34 = vpop.permute.xlu0 %1172  ;;  %v1177_v39 = vpop.permute.xlu1 %1176 }
 0x3bd   : > { %2652 = vmatmul.mubr.msk.bf16.vlgmr.msra.gmra.mxu1 %vm1206_vm4, %v1173_v34 }
 0x3be   : > { %2656 = vmatpush3.bf16.msra.mxu1 %v2921_v33  ;;  %2659 = vmatprep.mubr.msk.bf16.mxu1 %vm3332_vm3, %v3331_v11  ;;  %v2928_v33 = vld [vmem:[#allocation3 + $0x18] sm:$0xff]  }
 0x3bf   : > { %2657 = vmatprep.subr.bf16.mxu1 %v3331_v11 }
 0x3c0   : > { %v1175_v37 = vpop.permute.xlu0 %1174 }
 0x3c2   : > { %2658 = vmatpush3.bf16.msra.mxu1 %v2922_v35 }
 0x3c3   : > { %2663 = vmatprep.subr.bf16.mxu1 %v3331_v11 }
 0x3c5   : > { %2660 = vmatmul.mubr.msk.bf16.vlgmr.msra.gmra.mxu1 %vm1206_vm4, %v1175_v37 }
 0x3c6   : > { %2664 = vmatpush3.bf16.msra.mxu1 %v2923_v36  ;;  %2667 = vmatprep.mubr.msk.bf16.mxu1 %vm3332_vm3, %v3331_v11 }
 0x3c7   : > { %2665 = vmatprep.subr.bf16.mxu1 %v3331_v11 }
 0x3ca   : > { %2666 = vmatpush3.bf16.msra.mxu1 %v2924_v38 }
 0x3cb   : > { %2671 = vmatprep.subr.bf16.mxu1 %v3331_v11 }
 0x3cd   : > { %2668 = vmatmul.mubr.msk.bf16.vlgmr.msra.gmra.mxu1 %vm1206_vm4, %v1177_v39 }
 0x3ce   : > { %2673 = vmatprep.mubr.msk.bf16.mxu1 %vm3332_vm3, %v3331_v11  ;;  %2672 = vmatpush3.bf16.msra.mxu1 %v2925_v1 }
 0x3cf   : > { %2677 = vmatprep.subr.bf16.mxu1 %v3331_v11 }
 0x40b   : > { %v1244_v40 = vpop.f32.mrf.mxu1 }
 0x40c   : > { %v1416_v41 = vsel %vm1415_vm5, %v1244_v40, -inf }
 0x40d   : > { %1417 = vmax.xlane.f32.xlu1 %v1416_v41  ;;  %v2645_v42 = vpop.f32.mrf.mxu1 }
 0x40e   : > { %v2929_v42 = vld [vmem:[#allocation12 + $0x38] sm:$0xff]  }
 0x40f   : > { %v1247_v43 = vpop.f32.mrf.mxu1  ;;  %2696 = vmatpush3.bf16.msra.mxu0 %v2929_v42  ;;  %v2970_v42 = vld [vmem:[#allocation15 + $0x18] sm:$0xff]  }
 0x410   : > { %v2930_v43 = vld [vmem:[#allocation12 + $0x30] sm:$0xff]   ;;  %2697 = vmatprep.subr.bf16.mxu0 %v3331_v11 }
 0x411   : > { %v2646_v44 = vpop.f32.mrf.mxu1 }
 0x412   : > { %v2931_v44 = vld [vmem:[#allocation12 + $0x28] sm:$0xff]  }
 0x413   : > { %2698 = vmatpush3.bf16.msra.mxu0 %v2930_v43  ;;  %v2971_v43 = vld [vmem:[#allocation15 + $0x50] sm:$0xff]  }
 0x414   : > { %2699 = vmatprep.subr.bf16.mxu0 %v3331_v11 }
 0x417   : > { %2700 = vmatpush3.bf16.msra.mxu0 %v2931_v44  ;;  %v2972_v44 = vld [vmem:[#allocation15 + $0x10] sm:$0xff]  }
 0x418   : > { %2701 = vmatprep.subr.bf16.mxu0 %v3331_v11 }
 0x47d   : > { %v1299_v45 = vpop.f32.mrf.mxu1 }
 0x47e   : > { %v1419_v46 = vsel %vm1415_vm5, %v1299_v45, -inf }
 0x47f   : > { %1420 = vmax.xlane.f32.xlu0 %v1419_v46  ;;  %v2653_v47 = vpop.f32.mrf.mxu1  ;;  %v2933_v46 = vld [vmem:[#allocation12 + $0x18] sm:$0xff]  }
 0x480   : > { %v2934_v47 = vld [vmem:[#allocation12 + $0x10] sm:$0xff]  }
 0x481   : > { %v1302_v48 = vpop.f32.mrf.mxu1 }
 0x482   : > { %v2935_v48 = vld [vmem:[#allocation12 + $0x8] sm:$0xff]  }
 0x483   : > { %v2654_v49 = vpop.f32.mrf.mxu1 }
 0x485   : > { %v1354_v50 = vpop.f32.mrf.mxu1 }
 0x486   : > { %v1422_v51 = vsel %vm1415_vm5, %v1354_v50, -inf }
 0x487   : > { %1423 = vmax.xlane.f32.xlu0 %v1422_v51  ;;  %v2661_v52 = vpop.f32.mrf.mxu1  ;;  %v2936_v51 = vld [vmem:[#allocation12] sm:$0xff]  }
 0x489   : > { %v1357_v53 = vpop.f32.mrf.mxu1 }
 0x48b   : > { %v2662_v54 = vpop.f32.mrf.mxu1 }
 0x48d   : > { %v1409_v55 = vpop.f32.mrf.mxu1 }
 0x48e   : > { %v1425_v56 = vsel %vm1415_vm5, %v1409_v55, -inf }
 0x48f   : > { %1426 = vmax.xlane.f32.xlu1 %v1425_v56  ;;  %v2669_v57 = vpop.f32.mrf.mxu1 }
 0x491   : > { %v1412_v58 = vpop.f32.mrf.mxu1 }
 0x493   : > { %v2670_v59 = vpop.f32.mrf.mxu1 }
 0x496   : > { %v1418_v60 = vpop.xlane.xlu1 %1417 }
 0x497   : > { %v1428_v61 = vsub.f32 %v1244_v40, %v1418_v60 }
 0x499   : > { %v1432_v62 = vmul.f32 1.442695, %v1428_v61 }
 0x49b   : > { %2977 = vpow2.f32 %v1432_v62 }
 0x4a8   : > { %v2978_v63 = vpop.eup %2977 }
 0x4a9   : > { %v1440_v0 = vsel %vm1415_vm5, %v2978_v63, 0.0 }
 0x4aa   : > { %1441 = vadd.xlane.f32.xlu0 %v1440_v0 }
 0x508   : > { %v1421_v2 = vpop.xlane.xlu0 %1420 }
 0x509   : > { %v1429_v3 = vsub.f32 %v1299_v45, %v1421_v2  ;;  %v2932_v45 = vld [vmem:[#allocation12 + $0x20] sm:$0xff]  }
 0x50a   : > { %2702 = vmatpush3.bf16.msra.mxu0 %v2932_v45 }
 0x50b   : > { %v1434_v4 = vmul.f32 1.442695, %v1429_v3  ;;  %2703 = vmatprep.subr.bf16.mxu0 %v3331_v11 }
 0x50d   : > { %2979 = vpow2.f32 %v1434_v4  ;;  %v2431_v4 = vld [vmem:[%s3950_s10] ss:$0 sm:$0xff]  ;;  %s2196_s10 = sadd.s32 %s3297_s0, %s2478_s8  ;;  %s2185_s0 = scalar_lea.sflag [#allocation6], %s665_s13 }
 0x50e   : > { %2704 = vmatpush3.bf16.msra.mxu0 %v2933_v46  ;;  %s2479_s16 = sshll.u32 %s2196_s10, 7  ;;  %s3337_s8 = smov [#allocation16]  }
 0x50f   : > { %2705 = vmatprep.subr.bf16.mxu0 %v3331_v11  ;;  %s3185_s10 = sshll.u32 %s3337_s8, 4  ;;  %s3186_s10 = int_to_ptr.vmem [resolvable:$false] %s3185_s10 }
 0x510   : > { %v1424_v5 = vpop.xlane.xlu0 %1423  ;;  %s3187_s22 = scalar_lea.vmem %s3186_s10, 256  ;;  %p3188_p3 = scmp.lt.s32.totalorder %s2201_s3, %s3186_s10 }
 0x511   : > { %v1430_v6 = vsub.f32 %v1354_v50, %v1424_v5  ;;  %p3189_p4 = scmp.lt.s32.totalorder %s3187_s22, %s3181_s20 }
 0x512   : > { %2706 = vmatpush3.bf16.msra.mxu0 %v2934_v47 }
 0x513   : > { %v1436_v7 = vmul.f32 1.442695, %v1430_v6  ;;  %2707 = vmatprep.subr.bf16.mxu0 %v3331_v11  ;;  %p3190_p8 = por %p3189_p4, %p3188_p3 }
 0x515   : > { %2981 = vpow2.f32 %v1436_v7  ;;  %p3191_p9 = pnand %p3190_p8, %p3184_p6 }
 0x516   : > { %2708 = vmatpush3.bf16.msra.mxu0 %v2935_v48 }
 0x517   : > { %2709 = vmatprep.subr.bf16.mxu0 %v3331_v11 }
 0x518   : > { %v1427_v8 = vpop.xlane.xlu1 %1426 }
 0x519   : > { %v1431_v9 = vsub.f32 %v1409_v55, %v1427_v8 }
 0x51a   : > { %v2980_v10 = vpop.eup %2979  ;;  %2710 = vmatpush3.bf16.msra.mxu0 %v2936_v51  ;;  %v2441_v51 = vld [vmem:[%s3952_s11] ss:$0 sm:$0xff]  ;;  %s3957_s11 = sld [smem:[#allocation41_spill]] }
 0x51b   : > { %v1438_v12 = vmul.f32 1.442695, %v1431_v9  ;;  %v1443_v13 = vsel %vm1415_vm5, %v2980_v10, 0.0 }
 0x51c   : > { %1444 = vadd.xlane.f32.xlu1 %v1443_v13  ;;  %v2939_v13 = vld [vmem:[#allocation13 + $0x74] ss:$8 sps:$4 sm:$0xff]  }
 0x51d   : > { %2983 = vpow2.f32 %v1438_v12  ;;  %v2937_v12 = vld [vmem:[#allocation13 + $0x70] ss:$8 sps:$4 sm:$0xff]  }
 0x522   : > { %v2982_v14 = vpop.eup %2981 }
 0x523   : > { %v1446_v15 = vsel %vm1415_vm5, %v2982_v14, 0.0 }
 0x524   : > { %1447 = vadd.xlane.f32.xlu0 %v1446_v15  ;;  %v2940_v15 = vld [vmem:[#allocation13 + $0x60] ss:$8 sps:$4 sm:$0xff]  }
 0x52a   : > { %v2984_v16 = vpop.eup %2983 }
 0x52b   : > { %v1449_v17 = vsel %vm1415_vm5, %v2984_v16, 0.0 }
 0x52c   : > { %1450 = vadd.xlane.f32.xlu1 %v1449_v17 }
 0x533   : > { %v1442_v18 = vpop.xlane.xlu0 %1441 }
 0x534   : > { %2985 = vrcp.f32 %v1442_v18 }
 0x541   : > { %v2986_v20 = vpop.eup %2985 }
 0x542   : > { %v1456_v21 = vmul.f32 %v2986_v20, %v2978_v63 }
 0x544   : > { %v1460_v23 = vpack.c.bf16 %v1456_v21, %v1456_v21  ;;  %v2945_v21 = vld [vmem:[#allocation13 + $0x54] ss:$8 sps:$4 sm:$0xff]  }
 0x546   : > { %2674 = vmatmul.mubr.msk.bf16.vlgmr.msra.gmra.mxu1 %vm1415_vm5, %v1460_v23  ;;  %v2948_v23 = vld [vmem:[#allocation13 + $0x44] ss:$8 sps:$4 sm:$0xff]  }
 0x547   : > { %2678 = vmatpush3.bf16.msra.mxu1 %v2926_v22  ;;  %2679 = vmatprep.mubr.msk.bf16.mxu1 %vm3332_vm3, %v3331_v11  ;;  %v2943_v22 = vld [vmem:[#allocation13 + $0x50] ss:$8 sps:$4 sm:$0xff]  }
 0x548   : > { %2683 = vmatprep.subr.bf16.mxu1 %v3331_v11 }
 0x5a5   : > { %v1445_v24 = vpop.xlane.xlu1 %1444 }
 0x5a6   : > { %2987 = vrcp.f32 %v1445_v24  ;;  %v2951_v24 = vld [vmem:[#allocation13 + $0x34] ss:$8 sps:$4 sm:$0xff]  }
 0x5ad   : > { %v1448_v25 = vpop.xlane.xlu0 %1447 }
 0x5ae   : > { %2989 = vrcp.f32 %v1448_v25  ;;  %v2949_v25 = vld [vmem:[#allocation13 + $0x30] ss:$8 sps:$4 sm:$0xff]  }
 0x5b3   : > { %v2988_v26 = vpop.eup %2987 }
 0x5b4   : > { %v1457_v27 = vmul.f32 %v2988_v26, %v2980_v10  ;;  %v3336_v26 = vmov 0  }
 0x5b5   : > { %v1451_v28 = vpop.xlane.xlu1 %1450 }
 0x5b6   : > { %2991 = vrcp.f32 %v1451_v28  ;;  %v1461_v30 = vpack.c.bf16 %v1457_v27, %v1457_v27  ;;  %v2954_v27 = vld [vmem:[#allocation13 + $0x24] ss:$8 sps:$4 sm:$0xff]   ;;  %v2952_v28 = vld [vmem:[#allocation13 + $0x20] ss:$8 sps:$4 sm:$0xff]  }
 0x5b8   : > { %2680 = vmatmul.mubr.msk.bf16.vlgmr.msra.gmra.mxu1 %vm1415_vm5, %v1461_v30  ;;  %v2955_v30 = vld [vmem:[#allocation13 + $0x10] ss:$8 sps:$4 sm:$0xff]  }
 0x5b9   : > { %2684 = vmatpush3.bf16.msra.mxu1 %v2927_v29  ;;  %2685 = vmatprep.mubr.msk.bf16.mxu1 %vm3332_vm3, %v3331_v11  ;;  %v2957_v29 = vld [vmem:[#allocation13 + $0x14] ss:$8 sps:$4 sm:$0xff]  }
 0x5ba   : > { %2689 = vmatprep.subr.bf16.mxu1 %v3331_v11 }
 0x5bb   : > { %v2990_v31 = vpop.eup %2989 }
 0x5bc   : > { %v1458_v32 = vmul.f32 %v2990_v31, %v2982_v14  ;;  %v2942_v14 = vld [vmem:[#allocation13 + $0x64] ss:$8 sps:$4 sm:$0xff]  }
 0x5bd   : > { %v2960_v31 = vld [vmem:[#allocation13 + $0x4] ss:$8 sps:$4 sm:$0xff]  }
 0x5be   : > { %v1462_v34 = vpack.c.bf16 %v1458_v32, %v1458_v32  ;;  %v2958_v32 = vld [vmem:[#allocation13] ss:$8 sps:$4 sm:$0xff]  }
 0x5c0   : > { %2686 = vmatmul.mubr.msk.bf16.vlgmr.msra.gmra.mxu1 %vm1415_vm5, %v1462_v34  ;;  %v2962_v34 = vld [vmem:[#allocation15 + $0x38] sm:$0xff]  }
 0x5c1   : > { %2690 = vmatpush3.bf16.msra.mxu1 %v2928_v33  ;;  %2691 = vmatprep.mubr.msk.bf16.mxu1 %vm3332_vm3, %v3331_v11  ;;  %v2961_v33 = vld [vmem:[#allocation15 + $0x78] sm:$0xff]  }
 0x5c2   : > { %1935 = vmatprep.subr.bf16.mxu1 %v2939_v13  ;;  %2557 = vmatprep.subr.bf16.mxu0 %v2961_v33 }
 0x5c3   : > { %v2992_v35 = vpop.eup %2991 }
 0x5c4   : > { %v1459_v36 = vmul.f32 %v2992_v35, %v2984_v16  ;;  %v2963_v35 = vld [vmem:[#allocation15 + $0x70] sm:$0xff]  }
 0x5c6   : > { %v1463_v37 = vpack.c.bf16 %v1459_v36, %v1459_v36  ;;  %v2964_v36 = vld [vmem:[#allocation15 + $0x30] sm:$0xff]  }
 0x5c8   : > { %2692 = vmatmul.mubr.msk.bf16.vlgmr.msra.gmra.mxu1 %vm1415_vm5, %v1463_v37  ;;  %v2965_v37 = vld [vmem:[#allocation15 + $0x68] sm:$0xff]  }
 0x5c9   : > { %1936 = vmatpush1.bf16.msra.mxu1 %v2937_v12  ;;  %1967 = vmatprep.mubr.bf16.mxu1 %v3336_v26 }
 0x5ca   : > { %1937 = vmatprep.subr.bf16.mxu1 %v2942_v14 }
 0x5cd   : > { %1938 = vmatpush1.bf16.msra.mxu1 %v2940_v15 }
 0x5ce   : > { %1939 = vmatprep.subr.bf16.mxu1 %v2945_v21 }
 0x5d1   : > { %1940 = vmatpush1.bf16.msra.mxu1 %v2943_v22 }
 0x5d2   : > { %1941 = vmatprep.subr.bf16.mxu1 %v2948_v23 }
 0x606   : > { %v1515_v38 = vpop.f32.mrf.mxu1 }
 0x608   : > { %v2675_v39 = vpop.f32.mrf.mxu1 }
 0x609   : > { %v2967_v39 = vld [vmem:[#allocation15 + $0x60] sm:$0xff]  }
 0x60a   : > { %v1518_v40 = vpop.f32.mrf.mxu1 }
 0x60b   : > { %v2968_v40 = vld [vmem:[#allocation15 + $0x20] sm:$0xff]  }
 0x60c   : > { %v2676_v41 = vpop.f32.mrf.mxu1 }
 0x60d   : > { %v2969_v41 = vld [vmem:[#allocation15 + $0x58] sm:$0xff]  }
 0x678   : > { %v1564_v49 = vpop.f32.mrf.mxu1 }
 0x679   : > { %1669 = vrot.lane.b32.xlu0 %v1564_v49, %s3333_s15  ;;  %v2440_v49 = vld [vmem:[%s3951_s14] ss:$0 sm:$0xff]  ;;  %s3956_s14 = sld [smem:[#allocation40_spill]] }
 0x67a   : > { %v2681_v50 = vpop.f32.mrf.mxu1 }
 0x67c   : > { %v1567_v52 = vpop.f32.mrf.mxu1 }
 0x67e   : > { %v2682_v53 = vpop.f32.mrf.mxu1 }
 0x680   : > { %v1613_v54 = vpop.f32.mrf.mxu1 }
 0x681   : > { %1673 = vrot.lane.b32.xlu1 %v1613_v54, %s3335_s21  ;;  %s3954_s21 = sld [smem:[#allocation39_spill]] }
 0x682   : > { %v2687_v55 = vpop.f32.mrf.mxu1 }
 0x683   : > { %v2973_v55 = vld [vmem:[#allocation15 + $0x48] sm:$0xff]  }
 0x684   : > { %v1616_v56 = vpop.f32.mrf.mxu1 }
 0x685   : > { %v2974_v56 = vld [vmem:[#allocation15 + $0x8] sm:$0xff]  }
 0x686   : > { %v2688_v57 = vpop.f32.mrf.mxu1 }
 0x687   : > { %v2975_v57 = vld [vmem:[#allocation15 + $0x40] sm:$0xff]  }
 0x688   : > { %v1662_v58 = vpop.f32.mrf.mxu1  ;;  %v2458_v13 = vld [vmem:[%s3954_s21] ss:$0 sm:$0xff] }
 0x689   : > { %1677 = vrot.lane.b32.xlu1 %v1662_v58, %s3334_s12  ;;  %v2976_v58 = vld [vmem:[#allocation15] sm:$0xff]   ;;  %s3958_s12 = sld [smem:[#allocation42_spill]] }
 0x68a   : > { %v2693_v59 = vpop.f32.mrf.mxu1 }
 0x68b   : > { %v1845_v59 = vlaneseq }
 0x68c   : > { %v1665_v60 = vpop.f32.mrf.mxu1 }
 0x68d   : > { %v1846_v60 = vshrl.u32 %v1845_v59, 7 }
 0x68e   : > { %v2694_v61 = vpop.f32.mrf.mxu1 }
 0x68f   : > { %v1847_v61 = vsub.s32 0, %v1846_v60  ;;  %s2198_s21 = scalar_lea.hbm %s3958_s12, %s2479_s16 }
 0x6eb   : > { %v1670_v62 = vpop.permute.xlu0 %1669 }
 0x6ec   : > { %v1680_v11 = vsel %vm1206_vm4, %v1515_v38, %v1670_v62  ;;  %v2966_v38 = vld [vmem:[#allocation15 + $0x28] sm:$0xff]   ;;  %v1843_v62 = vld [vmem:[%s3953_s17] sm:$0x3] }
 0x6f3   : > { %v1674_v63 = vpop.permute.xlu1 %1673 }
 0x6f4   : > { %v1682_v0 = vsel %vm1681_vm6, %v1680_v11, %v1674_v63  ;;  %v1851_v63 = vsub.s32 1, %v1846_v60  ;;  %v1848_v11 = vrot.slane %v1843_v62, %v1847_v61 }
 0x6fb   : > { %v1678_v1 = vpop.permute.xlu1 %1677 }
 0x6fc   : > { %v1684_v2 = vsel %vm1683_vm7, %v1682_v0, %v1678_v1  ;;  %v1852_v0 = vrot.slane %v1843_v62, %v1851_v63 }
 0x6fd   : > { %v1685_v3 = vpack.c.bf16 %v1684_v2, %v1684_v2 }
 0x6ff   : > { %2712 = vmatmul.mubr.bf16.vlgmr.msra.gmra.mxu0 %v1685_v3 }
 0x700   : > { %2558 = vmatpush3.bf16.msra.mxu0 %v2962_v34 }
 0x701   : > { %2559 = vmatprep.subr.bf16.mxu0 %v2963_v35 }
 0x704   : > { %2560 = vmatpush3.bf16.msra.mxu0 %v2964_v36 }
 0x705   : > { %2561 = vmatprep.subr.bf16.mxu0 %v2965_v37 }
 0x708   : > { %2562 = vmatpush3.bf16.msra.mxu0 %v2966_v38 }
 0x709   : > { %2563 = vmatprep.subr.bf16.mxu0 %v2967_v39 }
 0x70c   : > { %2564 = vmatpush3.bf16.msra.mxu0 %v2968_v40 }
 0x70d   : > { %2565 = vmatprep.subr.bf16.mxu0 %v2969_v41 }
 0x710   : > { %2566 = vmatpush3.bf16.msra.mxu0 %v2970_v42 }
 0x711   : > { %2567 = vmatprep.subr.bf16.mxu0 %v2971_v43 }
 0x714   : > { %2568 = vmatpush3.bf16.msra.mxu0 %v2972_v44 }
 0x715   : > { %2569 = vmatprep.subr.bf16.mxu0 %v2973_v55 }
 0x718   : > { %2570 = vmatpush3.bf16.msra.mxu0 %v2974_v56 }
 0x719   : > { %2571 = vmatprep.subr.bf16.mxu0 %v2975_v57 }
 0x71c   : > { %2572 = vmatpush3.bf16.msra.mxu0 %v2976_v58 }
 0x7bf   : > { %v1791_v5 = vpop.f32.mrf.mxu0 }
 0x7c0   : > { %v1792_v6 = vadd.f32 %v2431_v4, %v1791_v5 }
 0x7c1   : > { %v2713_v7 = vpop.f32.mrf.mxu0 }
 0x7c2   : > { %v1797_v8 = vadd.f32 %v1792_v6, %v3728_v19  ;;  %v2946_v19 = vld [vmem:[#allocation13 + $0x40] ss:$8 sps:$4 sm:$0xff]  }
 0x7c3   : > { %v1794_v9 = vpop.f32.mrf.mxu0  ;;  %1942 = vmatpush1.bf16.msra.mxu1 %v2946_v19 }
 0x7c4   : > { %1800 = vadd.xlane.f32.xlu0 %v1797_v8  ;;  %1943 = vmatprep.subr.bf16.mxu1 %v2951_v24 }
 0x7c5   : > { %v2714_v10 = vpop.f32.mrf.mxu0 }
 0x7c7   : > { %1944 = vmatpush1.bf16.msra.mxu1 %v2949_v25 }
 0x7c8   : > { %1945 = vmatprep.subr.bf16.mxu1 %v2954_v27 }
 0x7cb   : > { %1946 = vmatpush1.bf16.msra.mxu1 %v2952_v28  ;;  %v2475_v28 = vld [vmem:[%s3956_s14] ss:$0 sm:$0xff] }
 0x7cc   : > { %1947 = vmatprep.subr.bf16.mxu1 %v2957_v29 }
 0x7cf   : > { %1948 = vmatpush1.bf16.msra.mxu1 %v2955_v30  ;;  %v2476_v30 = vld [vmem:[%s3957_s11] ss:$0 sm:$0xff] }
 0x7d0   : > { %1949 = vmatprep.subr.bf16.mxu1 %v2960_v31 }
 0x7d3   : > { %1950 = vmatpush1.bf16.msra.mxu1 %v2958_v32 }
 0x84d   : > { %v1801_v16 = vpop.xlane.xlu0 %1800 }
 0x84e   : > { %v1803_v17 = vmul.f32 0.0078125, %v1801_v16 }
 0x850   : > { %v1804_v18 = vsub.f32 %v1797_v8, %v1803_v17 }
 0x852   : > { %v1805_v20 = vmul.f32 %v1804_v18, %v1804_v18 }
 0x854   : > { %1806 = vadd.xlane.f32.xlu1 %v1805_v20 }
 0x8dd   : > { %v1807_v45 = vpop.xlane.xlu1 %1806 }
 0x8de   : > { %v1808_v46 = vmul.f32 0.0078125, %v1807_v45 }
 0x8e0   : > { %v1809_v47 = vadd.f32 1e-05, %v1808_v46 }
 0x8e2   : > { %2993 = vrsqrt.f32 %v1809_v47 }
 0x8ef   : > { %v2994_v48 = vpop.eup %2993 }
 0x8f0   : > { %v1811_v50 = vmul.f32 %v2994_v48, %v1804_v18 }
 0x8f2   : > { %v1818_v52 = vmul.f32 %v2440_v49, %v1811_v50 }
 0x8f4   : > { %v1825_v53 = vadd.f32 %v2441_v51, %v1818_v52 }
 0x8f6   : > { %v1826_v54 = vpack.c.bf16 %v1825_v53, %v1825_v53 }
 0x8f8   : > { %1968 = vmatmul.mubr.bf16.vlgmr.msra.gmra.mxu1 %v1826_v54 }
 0x9b8   : > { %v1969_v1 = vpop.f32.mrf.mxu1 }
 0x9b9   : > { %v1970_v2 = vadd.f32 %v1969_v1, %v1848_v11 }
 0x9ba   : > { %v1971_v3 = vpop.f32.mrf.mxu1 }
 0x9bb   : > { %v1972_v4 = vadd.f32 %v1971_v3, %v1852_v0  ;;  %v1976_v5 = vmax.f32 %v1970_v2, 0.0 }
 0x9bc   : > { %v1973_v6 = vpop.f32.mrf.mxu1 }
 0x9bd   : > { %v1977_v7 = vmax.f32 %v1972_v4, 0.0  ;;  %v1978_v10 = vpack.c.bf16 %v1976_v5, %v1976_v5 }
 0x9be   : > { %v1974_v8 = vpop.f32.mrf.mxu1 }
 0x9bf   : > { %v1979_v9 = vpack.c.bf16 %v1977_v7, %v1977_v7 }
 0x9c1   : > { %2147 = vmatprep.mubr.bf16.mxu0 %v1979_v9 }
 0x9c2   : > { %2148 = vmatmul.mubr.bf16.vlgmr.msra.gmra.mxu0 %v1978_v10 }
 0xa82   : > { %v2573_v12 = vpop.f32.mrf.mxu0 }
 0xa84   : > { %v2574_v14 = vpop.f32.mrf.mxu0 }
 0xa85   : > { %v2575_v15 = vadd.f32 %v2574_v14, %v2573_v12 }
 0xa86   : > { %v2576_v16 = vpop.f32.mrf.mxu0 }
 0xa87   : > { %v2150_v17 = vadd.f32 %v2575_v15, %v2458_v13 }
 0xa88   : > { %v2577_v18 = vpop.f32.mrf.mxu0 }
 0xa89   : > { %v2155_v20 = vadd.f32 %v2150_v17, %v1825_v53 }
 0xa8b   : > { %2158 = vadd.xlane.f32.xlu0 %v2155_v20 }
 0xb14   : > { %v2159_v21 = vpop.xlane.xlu0 %2158 }
 0xb15   : > { %v2160_v22 = vmul.f32 0.0078125, %v2159_v21 }
 0xb17   : > { %v2161_v19 = vsub.f32 %v2155_v20, %v2160_v22 }
 0xb19   : > { %v2162_v23 = vmul.f32 %v2161_v19, %v2161_v19 }
 0xb1b   : > { %2163 = vadd.xlane.f32.xlu0 %v2162_v23 }
 0xba4   : > { %v2164_v24 = vpop.xlane.xlu0 %2163 }
 0xba5   : > { %v2165_v25 = vmul.f32 0.0078125, %v2164_v24 }
 0xba7   : > { %v2166_v26 = vadd.f32 1e-05, %v2165_v25 }
 0xba9   : > { %2995 = vrsqrt.f32 %v2166_v26 }
 0xbb6   : > { %v2996_v27 = vpop.eup %2995 }
 0xbb7   : > { %v2168_v29 = vmul.f32 %v2996_v27, %v2161_v19 }
 0xbb9   : > { %v2175_v31 = vmul.f32 %v2475_v28, %v2168_v29 }
 0xbbb   : > { %v2182_v32 = vadd.f32 %v2476_v30, %v2175_v31 }
 0xbbd   : > { %2183 = vst [vmem:[%s667_s23] sm:$0xff] %v2182_v32 }
 0xbbe   : > { %3194 = shalt.err (!%p3191_p9)
}
 0xbbf   : > { %s3195_s27 = scalar_lea.hbm %s2198_s21, 128  ;;  %s3199_s23 = scalar_lea.hbm %s3958_s12, 512 }
 0xbc0   : > { %p3196_p10 = scmp.ne.s32.totalorder %s2198_s21, %s3195_s27  ;;  %p3200_p0 = scmp.lt.s32.totalorder %s2198_s21, %s3958_s12 }
 0xbc1   : > { %p3201_p5 = scmp.lt.s32.totalorder %s3199_s23, %s3195_s27 }
 0xbc2   : > { %p3197_p11 = pnand %p3196_p10, %p3621_p7 }
 0xbc3   : > { %p3202_p1 = por %p3201_p5, %p3200_p0 }
 0xbc4   : > { %p3198_p13 = pneg %p3197_p11 }
 0xbc6   : > { %p3203_p2 = pnand %p3202_p1, %p3198_p13 }
 0xbc8   : > { %3206 = shalt.err (!%p3203_p2)
}
 0xbc9   : > { %2741 = dma.vmem_to_hbm [thread:$0]  (%p3621_p7), %s2201_s3, 128, %s2198_s21, %s2185_s0  }
 0xbca PF: > { %p2783_p6 = scmp.ge.s32.totalorder %s3313_s1, 2  ;;  %s2212_s7 = sand.u32 1, %s3273_s24  }
 0xbcb   : > { %s2213_s11 = scalar_lea.sflag [#allocation6], %s2212_s7 }
 0xbcc   : > { %p2767_p3 = pnand %p2783_p6, %p3631_p12 }
 0xbce   : > { %p2768_p4 = pneg %p2767_p3 }
 0xbd0   : > { %3268 = dma.done.wait (%p2768_p4), %s2213_s11, 128  }
 0xbd1   : > { %3270 = vsyncadd (%p2768_p4), %s2213_s11, 4294967168  ;;  %s36_s1 = sadd.s32 1, %s3313_s1   ;;  %s3959_s30 = sld [smem:[#allocation23_spill]] }
 0xbd2   : > { %p33_p8 = scmp.ge.s32.totalorder %s36_s1, 6   ;;  %s3960_s6 = sld [smem:[#allocation24_spill]] }
 0xbd3   : > { %s3961_s19 = sld [smem:[#allocation25_spill]]  ;;  %s3962_s24 = smov %s3277_s25 }
 0xbd4   : > { %s3963_s25 = smov %s3281_s26  ;;  %s3964_s26 = smov %s3629_s9 }
 0xbd5   : > { %s3965_s27 = smov %s3289_s28  ;;  %s3966_s28 = smov %s3293_s29 }
 0xbd6   : > { %s3967_s29 = smov %s3626_s4  ;;  %s3968_s0 = smov %s3305_s18 }
 0xbd7   :  { %35 = sbr.rel (!%p33_p8) target bundleno = 30 (0x1e), region = 168 }
 0xbd8   : > { %s3969_s18 = smov %s3960_s6 }
 0xbdc   :  { %2218 = vsyncpa [#allocation5], 1 }
 0xbdd   :  { %2220 = vsyncpa [#allocation5 + $0x1], 1 }
 0xbde   :  { %2221 = vsyncpa [#allocation8], 1 }
 0xbdf   :  { %2222 = vsyncpa [#allocation11], 1 }
 0xbe0   :  { %2223 = vsyncpa [#allocation14], 1 }
 0xbe1   :  { %2224 = vsyncpa [#allocation6], 1 }
 0xbe2   :  { %2226 = vsyncpa [#allocation6 + $0x1], 1 }

</bundles_post_ra>
